<compile_context>
chip_gen: v7x
topology: tpu7x:2x2x1
jax: 0.10.0
libtpu: 0.0.40
codegen_flags: <defaults>
</compile_context>

<pallas_src>
import math
from functools import partial

import jax
import jax.numpy as jnp
from jax import lax
from jax.experimental import pallas as pl
from jax.experimental.pallas import tpu as pltpu


# Contract the last axis of both operands: A(m,k), B(n,k) -> A @ B^T  (m, n).
_DN_TRANS_B = (((1,), (1,)), ((), ()))


def _mha_kernel(scale, num_heads, head_dim,
                x_ref, w_in_ref, b_in_ref, w_out_ref, b_out_ref, o_ref):
    """One grid step == one block of query rows (all batch elements, all heads).

    x_ref    : (L, Nb, E)  full activation, native torch layout (seq, batch, embed)
    w_in_ref : (3, E, E)   packed q/k/v projection weights (torch in_proj_weight)
    b_in_ref : (3, 1, E)   packed q/k/v projection bias
    w_out_ref: (E, E)      out_proj.weight
    b_out_ref: (1, E)      out_proj.bias
    o_ref    : (Lq, Nb, E) output rows for this step's query block
    """
    L, Nb, E = x_ref.shape
    Lq = o_ref.shape[0]
    nh, hd = num_heads, head_dim
    i = pl.program_id(0)

    # ---- Packed QKV projections, batched over (row, batch) pairs (fat MXU calls). ----
    # K/V need every sequence position; Q only needs this step's query rows.
    x_all = x_ref[...].reshape(L * Nb, E)                                  # (L*Nb, E)
    q_start = pl.multiple_of(i * Lq, Lq)
    x_q = x_ref[pl.ds(q_start, Lq), :, :].reshape(Lq * Nb, E)              # (Lq*Nb, E)

    k = lax.dot_general(x_all, w_in_ref[1], _DN_TRANS_B,
                        preferred_element_type=jnp.float32) + b_in_ref[1]
    v = lax.dot_general(x_all, w_in_ref[2], _DN_TRANS_B,
                        preferred_element_type=jnp.float32) + b_in_ref[2]
    q = lax.dot_general(x_q, w_in_ref[0], _DN_TRANS_B,
                        preferred_element_type=jnp.float32) + b_in_ref[0]
    q = q * scale                                     # fold softmax scale into q once

    # Head-membership mask over the embedding lanes: mask[h, e] = 1 iff lane e is head h.
    h_idx = lax.broadcasted_iota(jnp.int32, (nh, E), 0)
    e_idx = lax.broadcasted_iota(jnp.int32, (nh, E), 1)
    head_mask = ((e_idx >= h_idx * hd) & (e_idx < (h_idx + 1) * hd)).astype(jnp.float32)

    q3 = q.reshape(Lq, Nb, E)
    k3 = k.reshape(L, Nb, E)
    v3 = v.reshape(L, Nb, E)

    ctx_per_batch = []
    for n in range(Nb):                               # Nb is small and static
        qn = q3[:, n, :]                              # (Lq, E)
        kn = k3[:, n, :]                              # (L,  E)
        vn = v3[:, n, :]                              # (L,  E)

        # Block-diagonal "mask-on-q" trick: one contraction over E yields EVERY head's
        # scores, with the softmax axis as the clean minor axis (no lane reshapes):
        #   s[h*Lq + lq, lk] = <q_h[lq], k_h[lk]>
        q_bd = (head_mask[:, None, :] * qn[None, :, :]).reshape(nh * Lq, E)
        s = lax.dot_general(q_bd, kn, _DN_TRANS_B,
                            preferred_element_type=jnp.float32)            # (nh*Lq, L)

        # Numerically stable softmax; exact divide (fp32 parity with torch).
        m = jnp.max(s, axis=-1, keepdims=True)
        p = jnp.exp(s - m)
        attn = p / jnp.sum(p, axis=-1, keepdims=True)

        # P @ V for all heads at once on head-masked V; heads occupy disjoint lanes, so
        # summing over the head axis reassembles the lane-merged (Lq, E) context in regs.
        v_bd = head_mask[:, None, :] * vn[None, :, :]                      # (nh, L, E)
        ctx_h = jnp.einsum('hqk,hke->hqe', attn.reshape(nh, Lq, L), v_bd,
                           preferred_element_type=jnp.float32)             # (nh, Lq, E)
        ctx_per_batch.append(jnp.sum(ctx_h, axis=0))                       # (Lq, E)

    # Merge batch elements back -> one fat out-projection and one lane-dense store.
    ctx = jnp.stack(ctx_per_batch, axis=1).reshape(Lq * Nb, E)             # (Lq*Nb, E)
    out = lax.dot_general(ctx, w_out_ref[...], _DN_TRANS_B,
                          preferred_element_type=jnp.float32) + b_out_ref[...]
    o_ref[...] = out.reshape(Lq, Nb, E)


def multi_head_attention(x, w_in, b_in, w_out, b_out, num_heads, q_block=None):
    """Equivalent of MultiHeadAttention.forward(x): self-attention, unmasked, eval mode.

    x      : (L, N, E)  seq-major layout (torch nn.MultiheadAttention default)
    w_in   : (3E, E)    packed q/k/v projection weight (torch in_proj_weight)
    b_in   : (3E,)      packed q/k/v projection bias   (torch in_proj_bias)
    w_out  : (E, E)     out_proj.weight
    b_out  : (E,)       out_proj.bias
    """
    L, N, E = x.shape
    assert E % num_heads == 0
    hd = E // num_heads
    scale = 1.0 / math.sqrt(hd)

    if q_block is None:
        # >=2 "parallel" grid steps when the sequence allows it: keeps both v7x
        # TensorCores busy; on single-core v5e/v6e the extra step costs ~0.35 us.
        q_block = L // 2 if (L % 2 == 0 and L >= 2) else L
    assert L % q_block == 0
    n_steps = L // q_block

    # Only cheap contiguous reshapes in the wrapper — no transposes, no extra HBM traffic.
    w_in3 = w_in.reshape(3, E, E)                      # [Wq, Wk, Wv]
    b_in3 = b_in.reshape(3, 1, E)
    b_out2 = b_out.reshape(1, E)

    flops = n_steps * (2 * E * E * N * (2 * L + 2 * q_block)
                       + 4 * N * num_heads * q_block * L * E)
    transcendentals = N * num_heads * L * L
    bytes_accessed = 4 * (2 * L * N * E + 4 * E * E + 4 * E)

    kern = partial(_mha_kernel, scale, num_heads, hd)
    return pl.pallas_call(
        kern,
        out_shape=jax.ShapeDtypeStruct((L, N, E), jnp.float32),
        grid=(n_steps,),
        in_specs=[
            pl.BlockSpec((L, N, E), lambda i: (0, 0, 0)),   # x (full block, resident)
            pl.BlockSpec((3, E, E), lambda i: (0, 0, 0)),   # in_proj weight
            pl.BlockSpec((3, 1, E), lambda i: (0, 0, 0)),   # in_proj bias
            pl.BlockSpec((E, E), lambda i: (0, 0)),         # out_proj weight
            pl.BlockSpec((1, E), lambda i: (0, 0)),         # out_proj bias
        ],
        out_specs=pl.BlockSpec((q_block, N, E), lambda i: (i, 0, 0)),
        compiler_params=pltpu.CompilerParams(
            dimension_semantics=("parallel",),
            vmem_limit_bytes=32 * 1024 * 1024),
        cost_estimate=pl.CostEstimate(flops=flops,
                                      transcendentals=transcendentals,
                                      bytes_accessed=bytes_accessed),
    )(x, w_in3, b_in3, w_out, b_out2)


def _mha_reference(x, w_in, b_in, w_out, b_out, num_heads):
    """Pure-JAX reference mirroring torch.nn.MultiheadAttention forward (no dropout)."""
    L, N, E = x.shape
    hd = E // num_heads
    hp = lax.Precision.HIGHEST
    wq, wk, wv = w_in[:E], w_in[E:2 * E], w_in[2 * E:]
    bq, bk, bv = b_in[:E], b_in[E:2 * E], b_in[2 * E:]
    q = jnp.einsum('lne,fe->lnf', x, wq, precision=hp) + bq
    k = jnp.einsum('lne,fe->lnf', x, wk, precision=hp) + bk
    v = jnp.einsum('lne,fe->lnf', x, wv, precision=hp) + bv
    q = q.reshape(L, N, num_heads, hd) * (1.0 / math.sqrt(hd))
    k = k.reshape(L, N, num_heads, hd)
    v = v.reshape(L, N, num_heads, hd)
    s = jnp.einsum('qnhd,knhd->nhqk', q, k, precision=hp)
    p = jax.nn.softmax(s, axis=-1)
    ctx = jnp.einsum('nhqk,knhd->qnhd', p, v, precision=hp).reshape(L, N, E)
    return jnp.einsum('qne,fe->qnf', ctx, w_out, precision=hp) + b_out


if __name__ == "__main__":
    # Module config: MultiHeadAttention(in_size=40, num_heads=10)
    num_heads = 10
    in_size = 40            # embed dim, divisible by num_heads
    L, N = 8, 2             # seq_len, batch

    key = jax.random.PRNGKey(0)
    k_x, k_win, k_bin, k_wout, k_bout = jax.random.split(key, 5)

    bound = 1.0 / math.sqrt(in_size)
    w_in = jax.random.uniform(k_win, (3 * in_size, in_size), jnp.float32, -bound, bound)
    b_in = jax.random.uniform(k_bin, (3 * in_size,), jnp.float32, -bound, bound)
    w_out = jax.random.uniform(k_wout, (in_size, in_size), jnp.float32, -bound, bound)
    b_out = jax.random.uniform(k_bout, (in_size,), jnp.float32, -bound, bound)
    x = jax.random.normal(k_x, (L, N, in_size), jnp.float32)

    out = multi_head_attention(x, w_in, b_in, w_out, b_out, num_heads)
    out = jax.block_until_ready(out)

    assert out.shape == (L, N, in_size)
    assert out.dtype == jnp.float32
    assert bool(jnp.all(jnp.isfinite(out)))

    ref = _mha_reference(x, w_in, b_in, w_out, b_out, num_heads)
    max_err = float(jnp.max(jnp.abs(out - ref)))
    assert max_err < 1e-3, f"max abs err vs reference: {max_err}"

    print("KERNEL_OK")
</pallas_src>

<mosaic_0001>
module attributes {stable_mosaic.version = 11 : i64} {
  func.func @_mha_kernel(%arg0: i32, %arg1: memref<8x2x40xf32, #tpu.memory_space<vmem>>, %arg2: memref<3x40x40xf32, #tpu.memory_space<vmem>>, %arg3: memref<3x1x40xf32, #tpu.memory_space<vmem>>, %arg4: memref<40x40xf32, #tpu.memory_space<vmem>>, %arg5: memref<1x40xf32, #tpu.memory_space<vmem>>, %arg6: memref<4x2x40xf32, #tpu.memory_space<vmem>>) attributes {dimension_semantics = [#tpu.dimension_semantics<parallel>], iteration_bounds = array<i64: 2>, scalar_prefetch = 0 : i64, scratch_operands = 0 : i64, tpu.core_type = #tpu.core_type<tc>, window_params = [{pipeline_mode = #tpu.pipeline_mode<synchronous>, transform_indices = @transform_0, window_bounds = array<i64: 8, 2, 40>}, {pipeline_mode = #tpu.pipeline_mode<synchronous>, transform_indices = @transform_1, window_bounds = array<i64: 3, 40, 40>}, {pipeline_mode = #tpu.pipeline_mode<synchronous>, transform_indices = @transform_2, window_bounds = array<i64: 3, 1, 40>}, {pipeline_mode = #tpu.pipeline_mode<synchronous>, transform_indices = @transform_3, window_bounds = array<i64: 40, 40>}, {pipeline_mode = #tpu.pipeline_mode<synchronous>, transform_indices = @transform_4, window_bounds = array<i64: 1, 40>}, {transform_indices = @transform_5, window_bounds = array<i64: 4, 2, 40>}]} {
    %c0 = arith.constant 0 : index
    %c0_0 = arith.constant 0 : index
    %c0_1 = arith.constant 0 : index
    %0 = vector.load %arg1[%c0, %c0_0, %c0_1] : memref<8x2x40xf32, #tpu.memory_space<vmem>>, vector<8x2x40xf32>
    %1 = vector.shape_cast %0 : vector<8x2x40xf32> to vector<16x40xf32>
    %c4_i32 = arith.constant 4 : i32
    %2 = arith.muli %arg0, %c4_i32 : i32
    %3 = tpu.assume_multiple %2, 4 : i32
    %4 = arith.index_cast %3 : i32 to index
    %c0_2 = arith.constant 0 : index
    %c0_3 = arith.constant 0 : index
    %5 = vector.load %arg1[%4, %c0_2, %c0_3] : memref<8x2x40xf32, #tpu.memory_space<vmem>>, vector<4x2x40xf32>
    %6 = vector.shape_cast %5 : vector<4x2x40xf32> to vector<8x40xf32>
    %c1 = arith.constant 1 : index
    %c0_4 = arith.constant 0 : index
    %c0_5 = arith.constant 0 : index
    %7 = vector.load %arg2[%c1, %c0_4, %c0_5] : memref<3x40x40xf32, #tpu.memory_space<vmem>>, vector<1x40x40xf32>
    %8 = vector.shape_cast %7 : vector<1x40x40xf32> to vector<40x40xf32>
    %cst = arith.constant dense<0.000000e+00> : vector<16x40xf32>
    %9 = tpu.matmul %1, %8, %cst {dimension_numbers = #tpu.dot_dimension_numbers<[1], [1], [0], [0], [0, 0, 1, 0], [], []>} : vector<16x40xf32>, vector<40x40xf32>, vector<16x40xf32> -> vector<16x40xf32>
    %c1_6 = arith.constant 1 : index
    %c0_7 = arith.constant 0 : index
    %c0_8 = arith.constant 0 : index
    %10 = vector.load %arg3[%c1_6, %c0_7, %c0_8] : memref<3x1x40xf32, #tpu.memory_space<vmem>>, vector<1x1x40xf32>
    %11 = vector.shape_cast %10 : vector<1x1x40xf32> to vector<1x40xf32>
    %12 = vector.broadcast %11 : vector<1x40xf32> to vector<16x40xf32>
    %13 = arith.addf %9, %12 : vector<16x40xf32>
    %c2 = arith.constant 2 : index
    %c0_9 = arith.constant 0 : index
    %c0_10 = arith.constant 0 : index
    %14 = vector.load %arg2[%c2, %c0_9, %c0_10] : memref<3x40x40xf32, #tpu.memory_space<vmem>>, vector<1x40x40xf32>
    %15 = vector.shape_cast %14 : vector<1x40x40xf32> to vector<40x40xf32>
    %cst_11 = arith.constant dense<0.000000e+00> : vector<16x40xf32>
    %16 = tpu.matmul %1, %15, %cst_11 {dimension_numbers = #tpu.dot_dimension_numbers<[1], [1], [0], [0], [0, 0, 1, 0], [], []>} : vector<16x40xf32>, vector<40x40xf32>, vector<16x40xf32> -> vector<16x40xf32>
    %c2_12 = arith.constant 2 : index
    %c0_13 = arith.constant 0 : index
    %c0_14 = arith.constant 0 : index
    %17 = vector.load %arg3[%c2_12, %c0_13, %c0_14] : memref<3x1x40xf32, #tpu.memory_space<vmem>>, vector<1x1x40xf32>
    %18 = vector.shape_cast %17 : vector<1x1x40xf32> to vector<1x40xf32>
    %19 = vector.broadcast %18 : vector<1x40xf32> to vector<16x40xf32>
    %20 = arith.addf %16, %19 : vector<16x40xf32>
    %c0_15 = arith.constant 0 : index
    %c0_16 = arith.constant 0 : index
    %c0_17 = arith.constant 0 : index
    %21 = vector.load %arg2[%c0_15, %c0_16, %c0_17] : memref<3x40x40xf32, #tpu.memory_space<vmem>>, vector<1x40x40xf32>
    %22 = vector.shape_cast %21 : vector<1x40x40xf32> to vector<40x40xf32>
    %cst_18 = arith.constant dense<0.000000e+00> : vector<8x40xf32>
    %23 = tpu.matmul %6, %22, %cst_18 {dimension_numbers = #tpu.dot_dimension_numbers<[1], [1], [0], [0], [0, 0, 1, 0], [], []>} : vector<8x40xf32>, vector<40x40xf32>, vector<8x40xf32> -> vector<8x40xf32>
    %c0_19 = arith.constant 0 : index
    %c0_20 = arith.constant 0 : index
    %c0_21 = arith.constant 0 : index
    %24 = vector.load %arg3[%c0_19, %c0_20, %c0_21] : memref<3x1x40xf32, #tpu.memory_space<vmem>>, vector<1x1x40xf32>
    %25 = vector.shape_cast %24 : vector<1x1x40xf32> to vector<1x40xf32>
    %26 = vector.broadcast %25 : vector<1x40xf32> to vector<8x40xf32>
    %27 = arith.addf %23, %26 : vector<8x40xf32>
    %cst_22 = arith.constant 5.000000e-01 : f32
    %28 = vector.broadcast %cst_22 : f32 to vector<8x40xf32>
    %29 = arith.mulf %27, %28 : vector<8x40xf32>
    %30 = tpu.iota {dimensions = array<i32: 0>} : vector<10x40xi32>
    %31 = tpu.iota {dimensions = array<i32: 1>} : vector<10x40xi32>
    %c4_i32_23 = arith.constant 4 : i32
    %32 = vector.broadcast %c4_i32_23 : i32 to vector<10x40xi32>
    %33 = arith.muli %30, %32 : vector<10x40xi32>
    %34 = arith.cmpi sge, %31, %33 : vector<10x40xi32>
    %c1_i32 = arith.constant 1 : i32
    %35 = vector.broadcast %c1_i32 : i32 to vector<10x40xi32>
    %36 = arith.addi %30, %35 : vector<10x40xi32>
    %c4_i32_24 = arith.constant 4 : i32
    %37 = vector.broadcast %c4_i32_24 : i32 to vector<10x40xi32>
    %38 = arith.muli %36, %37 : vector<10x40xi32>
    %39 = arith.cmpi slt, %31, %38 : vector<10x40xi32>
    %40 = arith.andi %34, %39 : vector<10x40xi1>
    %41 = arith.extui %40 : vector<10x40xi1> to vector<10x40xi32>
    %42 = arith.sitofp %41 : vector<10x40xi32> to vector<10x40xf32>
    %43 = vector.shape_cast %29 : vector<8x40xf32> to vector<4x2x40xf32>
    %44 = vector.shape_cast %13 : vector<16x40xf32> to vector<8x2x40xf32>
    %45 = vector.shape_cast %20 : vector<16x40xf32> to vector<8x2x40xf32>
    %46 = vector.extract_strided_slice %43 {offsets = [0, 0, 0], sizes = [4, 1, 40], strides = [1, 1, 1]} : vector<4x2x40xf32> to vector<4x1x40xf32>
    %47 = vector.shape_cast %46 : vector<4x1x40xf32> to vector<4x40xf32>
    %48 = vector.extract_strided_slice %44 {offsets = [0, 0, 0], sizes = [8, 1, 40], strides = [1, 1, 1]} : vector<8x2x40xf32> to vector<8x1x40xf32>
    %49 = vector.shape_cast %48 : vector<8x1x40xf32> to vector<8x40xf32>
    %50 = vector.extract_strided_slice %45 {offsets = [0, 0, 0], sizes = [8, 1, 40], strides = [1, 1, 1]} : vector<8x2x40xf32> to vector<8x1x40xf32>
    %51 = vector.shape_cast %50 : vector<8x1x40xf32> to vector<8x40xf32>
    %52 = vector.shape_cast %42 : vector<10x40xf32> to vector<10x1x40xf32>
    %53 = vector.shape_cast %47 : vector<4x40xf32> to vector<1x4x40xf32>
    %54 = vector.broadcast %52 : vector<10x1x40xf32> to vector<10x4x40xf32>
    %55 = vector.broadcast %53 : vector<1x4x40xf32> to vector<10x4x40xf32>
    %56 = arith.mulf %54, %55 : vector<10x4x40xf32>
    %57 = vector.shape_cast %56 : vector<10x4x40xf32> to vector<40x40xf32>
    %cst_25 = arith.constant dense<0.000000e+00> : vector<40x8xf32>
    %58 = tpu.matmul %57, %49, %cst_25 {dimension_numbers = #tpu.dot_dimension_numbers<[1], [1], [0], [0], [0, 0, 1, 0], [], []>} : vector<40x40xf32>, vector<8x40xf32>, vector<40x8xf32> -> vector<40x8xf32>
    %cst_26 = arith.constant dense<0xFF800000> : vector<40xf32>
    %59 = vector.multi_reduction <maximumf>, %58, %cst_26 [1] : vector<40x8xf32> to vector<40xf32>
    %60 = vector.shape_cast %59 : vector<40xf32> to vector<40x1xf32>
    %61 = vector.broadcast %60 : vector<40x1xf32> to vector<40x8xf32>
    %62 = arith.subf %58, %61 : vector<40x8xf32>
    %63 = math.exp %62 : vector<40x8xf32>
    %cst_27 = arith.constant dense<0.000000e+00> : vector<40xf32>
    %64 = vector.multi_reduction <add>, %63, %cst_27 [1] : vector<40x8xf32> to vector<40xf32>
    %65 = vector.shape_cast %64 : vector<40xf32> to vector<40x1xf32>
    %66 = vector.broadcast %65 : vector<40x1xf32> to vector<40x8xf32>
    %67 = arith.divf %63, %66 : vector<40x8xf32>
    %68 = vector.shape_cast %42 : vector<10x40xf32> to vector<10x1x40xf32>
    %69 = vector.shape_cast %51 : vector<8x40xf32> to vector<1x8x40xf32>
    %70 = vector.broadcast %68 : vector<10x1x40xf32> to vector<10x8x40xf32>
    %71 = vector.broadcast %69 : vector<1x8x40xf32> to vector<10x8x40xf32>
    %72 = arith.mulf %70, %71 : vector<10x8x40xf32>
    %73 = vector.shape_cast %67 : vector<40x8xf32> to vector<10x4x8xf32>
    "tpu.trace_start"() <{level = 10 : i32, message = "hqk,hke->hqe"}> : () -> ()
    %cst_28 = arith.constant dense<0.000000e+00> : vector<10x4x40xf32>
    %74 = tpu.matmul %73, %72, %cst_28 {dimension_numbers = #tpu.dot_dimension_numbers<[2], [1], [1], [2], [0, 0, 0, 1, 1, 2], [0], [0]>} : vector<10x4x8xf32>, vector<10x8x40xf32>, vector<10x4x40xf32> -> vector<10x4x40xf32>
    "tpu.trace_stop"() : () -> ()
    %cst_29 = arith.constant dense<0.000000e+00> : vector<4x40xf32>
    %75 = vector.multi_reduction <add>, %74, %cst_29 [0] : vector<10x4x40xf32> to vector<4x40xf32>
    %76 = vector.extract_strided_slice %43 {offsets = [0, 1, 0], sizes = [4, 1, 40], strides = [1, 1, 1]} : vector<4x2x40xf32> to vector<4x1x40xf32>
    %77 = vector.shape_cast %76 : vector<4x1x40xf32> to vector<4x40xf32>
    %78 = vector.extract_strided_slice %44 {offsets = [0, 1, 0], sizes = [8, 1, 40], strides = [1, 1, 1]} : vector<8x2x40xf32> to vector<8x1x40xf32>
    %79 = vector.shape_cast %78 : vector<8x1x40xf32> to vector<8x40xf32>
    %80 = vector.extract_strided_slice %45 {offsets = [0, 1, 0], sizes = [8, 1, 40], strides = [1, 1, 1]} : vector<8x2x40xf32> to vector<8x1x40xf32>
    %81 = vector.shape_cast %80 : vector<8x1x40xf32> to vector<8x40xf32>
    %82 = vector.shape_cast %42 : vector<10x40xf32> to vector<10x1x40xf32>
    %83 = vector.shape_cast %77 : vector<4x40xf32> to vector<1x4x40xf32>
    %84 = vector.broadcast %82 : vector<10x1x40xf32> to vector<10x4x40xf32>
    %85 = vector.broadcast %83 : vector<1x4x40xf32> to vector<10x4x40xf32>
    %86 = arith.mulf %84, %85 : vector<10x4x40xf32>
    %87 = vector.shape_cast %86 : vector<10x4x40xf32> to vector<40x40xf32>
    %cst_30 = arith.constant dense<0.000000e+00> : vector<40x8xf32>
    %88 = tpu.matmul %87, %79, %cst_30 {dimension_numbers = #tpu.dot_dimension_numbers<[1], [1], [0], [0], [0, 0, 1, 0], [], []>} : vector<40x40xf32>, vector<8x40xf32>, vector<40x8xf32> -> vector<40x8xf32>
    %cst_31 = arith.constant dense<0xFF800000> : vector<40xf32>
    %89 = vector.multi_reduction <maximumf>, %88, %cst_31 [1] : vector<40x8xf32> to vector<40xf32>
    %90 = vector.shape_cast %89 : vector<40xf32> to vector<40x1xf32>
    %91 = vector.broadcast %90 : vector<40x1xf32> to vector<40x8xf32>
    %92 = arith.subf %88, %91 : vector<40x8xf32>
    %93 = math.exp %92 : vector<40x8xf32>
    %cst_32 = arith.constant dense<0.000000e+00> : vector<40xf32>
    %94 = vector.multi_reduction <add>, %93, %cst_32 [1] : vector<40x8xf32> to vector<40xf32>
    %95 = vector.shape_cast %94 : vector<40xf32> to vector<40x1xf32>
    %96 = vector.broadcast %95 : vector<40x1xf32> to vector<40x8xf32>
    %97 = arith.divf %93, %96 : vector<40x8xf32>
    %98 = vector.shape_cast %42 : vector<10x40xf32> to vector<10x1x40xf32>
    %99 = vector.shape_cast %81 : vector<8x40xf32> to vector<1x8x40xf32>
    %100 = vector.broadcast %98 : vector<10x1x40xf32> to vector<10x8x40xf32>
    %101 = vector.broadcast %99 : vector<1x8x40xf32> to vector<10x8x40xf32>
    %102 = arith.mulf %100, %101 : vector<10x8x40xf32>
    %103 = vector.shape_cast %97 : vector<40x8xf32> to vector<10x4x8xf32>
    "tpu.trace_start"() <{level = 10 : i32, message = "hqk,hke->hqe"}> : () -> ()
    %cst_33 = arith.constant dense<0.000000e+00> : vector<10x4x40xf32>
    %104 = tpu.matmul %103, %102, %cst_33 {dimension_numbers = #tpu.dot_dimension_numbers<[2], [1], [1], [2], [0, 0, 0, 1, 1, 2], [0], [0]>} : vector<10x4x8xf32>, vector<10x8x40xf32>, vector<10x4x40xf32> -> vector<10x4x40xf32>
    "tpu.trace_stop"() : () -> ()
    %cst_34 = arith.constant dense<0.000000e+00> : vector<4x40xf32>
    %105 = vector.multi_reduction <add>, %104, %cst_34 [0] : vector<10x4x40xf32> to vector<4x40xf32>
    %106 = vector.shape_cast %75 : vector<4x40xf32> to vector<4x1x40xf32>
    %107 = vector.shape_cast %105 : vector<4x40xf32> to vector<4x1x40xf32>
    %108 = tpu.concatenate %106, %107 in 1 : vector<4x1x40xf32>, vector<4x1x40xf32> -> vector<4x2x40xf32>
    %109 = vector.shape_cast %108 : vector<4x2x40xf32> to vector<8x40xf32>
    %c0_35 = arith.constant 0 : index
    %c0_36 = arith.constant 0 : index
    %110 = vector.load %arg4[%c0_35, %c0_36] : memref<40x40xf32, #tpu.memory_space<vmem>>, vector<40x40xf32>
    %cst_37 = arith.constant dense<0.000000e+00> : vector<8x40xf32>
    %111 = tpu.matmul %109, %110, %cst_37 {dimension_numbers = #tpu.dot_dimension_numbers<[1], [1], [0], [0], [0, 0, 1, 0], [], []>} : vector<8x40xf32>, vector<40x40xf32>, vector<8x40xf32> -> vector<8x40xf32>
    %c0_38 = arith.constant 0 : index
    %c0_39 = arith.constant 0 : index
    %112 = vector.load %arg5[%c0_38, %c0_39] : memref<1x40xf32, #tpu.memory_space<vmem>>, vector<1x40xf32>
    %113 = vector.broadcast %112 : vector<1x40xf32> to vector<8x40xf32>
    %114 = arith.addf %111, %113 : vector<8x40xf32>
    %115 = vector.shape_cast %114 : vector<8x40xf32> to vector<4x2x40xf32>
    %c0_40 = arith.constant 0 : index
    %c0_41 = arith.constant 0 : index
    %c0_42 = arith.constant 0 : index
    %116 = vector.load %arg6[%c0_40, %c0_41, %c0_42] : memref<4x2x40xf32, #tpu.memory_space<vmem>>, vector<4x2x40xf32>
    tpu.vector_store %arg6[%c0_40, %c0_41, %c0_42], %115 {strides = array<i32>} : memref<4x2x40xf32, #tpu.memory_space<vmem>>, vector<4x2x40xf32>,
    return
  }
  func.func @transform_0(%arg0: i32) -> (i32, i32, i32) {
    %c0_i32 = arith.constant 0 : i32
    %c0_i32_0 = arith.constant 0 : i32
    %c0_i32_1 = arith.constant 0 : i32
    %c0_i32_2 = arith.constant 0 : i32
    return %c0_i32, %c0_i32_0, %c0_i32_1 : i32, i32, i32
  }
  func.func @transform_1(%arg0: i32) -> (i32, i32, i32) {
    %c0_i32 = arith.constant 0 : i32
    %c0_i32_0 = arith.constant 0 : i32
    %c0_i32_1 = arith.constant 0 : i32
    %c0_i32_2 = arith.constant 0 : i32
    return %c0_i32, %c0_i32_0, %c0_i32_1 : i32, i32, i32
  }
  func.func @transform_2(%arg0: i32) -> (i32, i32, i32) {
    %c0_i32 = arith.constant 0 : i32
    %c0_i32_0 = arith.constant 0 : i32
    %c0_i32_1 = arith.constant 0 : i32
    %c0_i32_2 = arith.constant 0 : i32
    return %c0_i32, %c0_i32_0, %c0_i32_1 : i32, i32, i32
  }
  func.func @transform_3(%arg0: i32) -> (i32, i32) {
    %c0_i32 = arith.constant 0 : i32
    %c0_i32_0 = arith.constant 0 : i32
    %c0_i32_1 = arith.constant 0 : i32
    return %c0_i32, %c0_i32_0 : i32, i32
  }
  func.func @transform_4(%arg0: i32) -> (i32, i32) {
    %c0_i32 = arith.constant 0 : i32
    %c0_i32_0 = arith.constant 0 : i32
    %c0_i32_1 = arith.constant 0 : i32
    return %c0_i32, %c0_i32_0 : i32, i32
  }
  func.func @transform_5(%arg0: i32) -> (i32, i32, i32) {
    %c0_i32 = arith.constant 0 : i32
    %c0_i32_0 = arith.constant 0 : i32
    %c0_i32_1 = arith.constant 0 : i32
    return %arg0, %c0_i32, %c0_i32_0 : i32, i32, i32
  }
}

</mosaic_0001>

<bundles_post_ra>
// kernel: tpu_custom_call.1
= control target key start
LH: loop header
LB: loop body
LE: loop exit
PB: predicated region body
PF: predicated region fallthrough
CT: control target
= control target key end

     0   :  { %s4683_s0 = inlined_call_operand.hbm [shape: f32[8,2,40], index: 0, kind: input, shape index: {}]   ;;  %s4684_s1 = inlined_call_operand.hbm [shape: f32[3,40,40], index: 1, kind: input, shape index: {}]   ;;  %s4685_s2 = inlined_call_operand.vmem [shape: f32[3,1,40], index: 2, kind: input, shape index: {}]   ;;  %s4686_s3 = inlined_call_operand.hbm [shape: f32[40,40], index: 3, kind: input, shape index: {}]   ;;  %s4687_s4 = inlined_call_operand.vmem [shape: f32[1,40], index: 4, kind: input, shape index: {}]   ;;  %s4688_s5 = inlined_call_operand.hbm [shape: f32[8,2,40], index: 5, kind: output, shape index: {}]  }
   0x1   :  { %4694 = sst [smem:[#allocation12_spill]] %s4684_s1 }
   0x2   :  { %10 = vsyncpa [#allocation3], 0 }
   0x3   :  { %11 = vsyncpa [#allocation6], 0 }
   0x4   :  { %12 = vsyncpa [#allocation4], 0 }
   0x5   :  { %14 = vsyncpa [#allocation4 + $0x1], 0  ;;  %s3998_s18 = smov 0   ;;  %s4000_s19 = smov 0  }
   0x6   :  { %s4002_s20 = smov 0   ;;  %s4004_s21 = smov 0  }
   0x7 LB: > { %s4019_s22 = sadd.s32 4294967295, %s3951_s21   ;;  %s3285_s23 = sadd.s32 4294967294, %s3951_s21   ;;  %s3951_s21 = sphi %s4004_s21, %s4723_s21   ;;  %s3947_s20 = sphi %s4002_s20, %s4722_s20   ;;  %s3943_s19 = sphi %s4000_s19, %s4721_s19   ;;  %s3939_s18 = sphi %s3998_s18, %s4720_s18  }
   0x8   : > { %s4023_s24 = sadd.s32 1, %s3951_s21   ;;  %s132_s25 = sadd.s32 1, %s3947_s20 }
   0x9   : > { %s129_s26 = ssub.s32 %s3951_s21, %s4023_s24  ;;  %p142_p0 = scmp.ne.s32.totalorder %s3947_s20, %s3943_s19 }
   0xa   : > { %p130_p1 = scmp.eq.s32.totalorder %s129_s26, 0  ;;  %p143_p2 = scmp.eq.s32.totalorder %s4019_s22, 1 }
   0xb   : > { %p148_p3 = scmp.ne.s32.totalorder %s3943_s19, %s3939_s18  ;;  %p149_p4 = scmp.eq.s32.totalorder %s3285_s23, 1 }
   0xc   : > { %s4034_s27 = scalar_select %p130_p1, %s3947_s20, %s132_s25  }
   0xd   : > { %p4036_p5 = por %p143_p2, %p142_p0  ;;  %p4040_p6 = por %p149_p4, %p148_p3 }
   0xe   : > { %p3286_p7 = scmp.ge.s32.totalorder %s3951_s21, 1  ;;  %p156_p8 = scmp.lt.s32.totalorder %s3951_s21, 3 }
   0xf   : > { %s4695_s28 = scalar_select %p4036_p5, 1, 0 }
  0x10   : > { %s4696_s29 = scalar_select %p4040_p6, 1, 0 }
  0x11   : > { %p4689_p9 = scmp.eq.s32.totalorder %s4019_s22, 0  ;;  %p4047_p10 = pnand %p3286_p7, %p156_p8 }
  0x12   : > { %s3953_s6 = smov [#allocation5]   ;;  %s3954_s9 = smov [#allocation2]  }
  0x13   : > { %s4697_s30 = scalar_select %p4047_p10, 1, 0 }
  0x14   : > { %s181_s7 = sshll.u32 %s3953_s6, 4  ;;  %p3690_p11 = pneg %p4047_p10  ;;  %s182_s7 = int_to_ptr.vmem [resolvable:$true] %s181_s7 }
  0x15   : > { %s168_s10 = sshll.u32 %s3954_s9, 4  ;;  %s4699_s1 = sld [smem:[#allocation12_spill]]  ;;  %s4059_s10 = int_to_ptr.vmem [resolvable:$true] %s168_s10 }
  0x16   : > { %p4055_p12 = pnand %p4689_p9, %p3690_p11 }
  0x18   : > { %p4069_p0 = pneg %p4055_p12 }
  0x1b   : > { %s3797_s13 = scalar_lea.hbm %s4699_s1, 1920 }
  0x1c   : > { %p3798_p13 = scmp.ne.s32.totalorder %s4699_s1, %s3797_s13  ;;  %p3804_p3 = scmp.lt.u32.totalorder %s3797_s13, %s4699_s1 }
  0x1e   : > { %p3800_p1 = pnand %p4069_p0, %p3798_p13 }
  0x20   : > { %p3801_p2 = pneg %p3800_p1 }
  0x22   : > { %p3806_p4 = pnand %p3804_p3, %p3801_p2 }
  0x24   : > { %3809 = shalt.err (!%p3806_p4)
}
  0x25   : > { %s3810_s25 = scalar_lea.vmem %s182_s7, 1920  ;;  %p3818_p9 = scmp.lt.s32.totalorder %s182_s7, %s182_s7 }
  0x26   : > { %p3811_p7 = scmp.ne.s32.totalorder %s182_s7, %s3810_s25  ;;  %p3819_p6 = scmp.lt.s32.totalorder %s3810_s25, %s3810_s25 }
  0x28   : > { %p3813_p8 = pnand %p3811_p7, %p4069_p0  ;;  %p3820_p5 = por %p3819_p6, %p3818_p9 }
  0x2a   : > { %p3814_p11 = pneg %p3813_p8 }
  0x2c   : > { %p3821_p10 = pnand %p3820_p5, %p3814_p11 }
  0x2e   : > { %3824 = shalt.err (!%p3821_p10)
}
  0x2f   : > { %s4692_s26 = smov 128   ;;  %s4693_s6 = smov 8  }
  0x30   : > { %3696 = dma.hbm_to_vmem [thread:$0]  (!%p4055_p12), %s4699_s1, 1920, %s182_s7, [#allocation6], %s4692_s26, %s4692_s26, %s4693_s6  }
  0x31   : > { %s3825_s14 = scalar_lea.hbm %s4683_s0, 256 }
  0x32   : > { %p3826_p5 = scmp.ne.s32.totalorder %s4683_s0, %s3825_s14  ;;  %p3832_p10 = scmp.lt.u32.totalorder %s3825_s14, %s4683_s0 }
  0x34   : > { %p3828_p6 = pnand %p3826_p5, %p4069_p0 }
  0x36   : > { %p3829_p9 = pneg %p3828_p6 }
  0x38   : > { %p3834_p13 = pnand %p3832_p10, %p3829_p9 }
  0x3a   : > { %3837 = shalt.err (!%p3834_p13)
}
  0x3b   : > { %s3838_s7 = scalar_lea.vmem %s4059_s10, 256  ;;  %p3846_p4 = scmp.lt.s32.totalorder %s4059_s10, %s4059_s10 }
  0x3c   : > { %p3839_p1 = scmp.ne.s32.totalorder %s4059_s10, %s3838_s7  ;;  %p3847_p7 = scmp.lt.s32.totalorder %s3838_s7, %s3838_s7 }
  0x3e   : > { %p3841_p2 = pnand %p3839_p1, %p4069_p0  ;;  %p3848_p8 = por %p3847_p7, %p3846_p4 }
  0x40   : > { %p3842_p3 = pneg %p3841_p2 }
  0x42   : > { %p3849_p11 = pnand %p3848_p8, %p3842_p3 }
  0x44   : > { %3852 = shalt.err (!%p3849_p11)
}
  0x45   : > { %s3957_s9 = smov 32   ;;  %s3958_s11 = smov 2  }
  0x46   : > { %3693 = dma.hbm_to_vmem [thread:$0]  (!%p4055_p12), %s4683_s0, 256, %s4059_s10, [#allocation3], %s3957_s9, %s3957_s9, %s3958_s11  }
  0x47   : > { %s3959_s14 = smov [#allocation7]   ;;  %s3853_s25 = scalar_lea.hbm %s4686_s3, 640 }
  0x48   : > { %s197_s15 = sshll.u32 %s3959_s14, 4  ;;  %p3854_p5 = scmp.ne.s32.totalorder %s4686_s3, %s3853_s25  ;;  %s198_s15 = int_to_ptr.vmem [resolvable:$true] %s197_s15 }
  0x49   : > { %p3860_p10 = scmp.lt.u32.totalorder %s3853_s25, %s4686_s3 }
  0x4a   : > { %p3856_p6 = pnand %p3854_p5, %p4069_p0 }
  0x4c   : > { %p3857_p9 = pneg %p3856_p6 }
  0x4e   : > { %p3862_p13 = pnand %p3860_p10, %p3857_p9 }
  0x50   : > { %3865 = shalt.err (!%p3862_p13)
}
  0x51   : > { %s3866_s10 = scalar_lea.vmem %s198_s15, 640  ;;  %p3874_p4 = scmp.lt.s32.totalorder %s198_s15, %s198_s15 }
  0x52   : > { %p3867_p1 = scmp.ne.s32.totalorder %s198_s15, %s3866_s10  ;;  %p3875_p7 = scmp.lt.s32.totalorder %s3866_s10, %s3866_s10 }
  0x54   : > { %p3869_p2 = pnand %p3867_p1, %p4069_p0  ;;  %p3876_p8 = por %p3875_p7, %p3874_p4 }
  0x56   : > { %p3870_p3 = pneg %p3869_p2 }
  0x58   : > { %p3877_p11 = pnand %p3876_p8, %p3870_p3 }
  0x5a   : > { %3880 = shalt.err (!%p3877_p11)
}
  0x5b   : > { %s4701_s26 = smov 8   ;;  %s4702_s9 = smov 128  }
  0x5c   : > { %3699 = dma.hbm_to_vmem [thread:$0]  (!%p4055_p12), %s4686_s3, 640, %s198_s15, [#allocation6], %s4702_s9, %s4702_s9, %s4701_s26  }
  0x5d   : > { %p4703_p5 = scmp.ne.s32.totalorder %s4697_s30, 0 }
  0x5e   : > { %p4704_p0 = scmp.eq.s32.totalorder (!%p4703_p5), %s4019_s22, 0 }
  0x5f   : > { %216 = sbr.rel (%p4703_p5) target bundleno = 1947 (0x79b), region = 40 }
  0x66   : > { %3926 = dma.done.wait (%p4704_p0), [#allocation3], 256   ;;  %p4705_p6 = pmov %p4704_p0 }
  0x67   : > { %p4706_p9 = pmov %p4704_p0 }
  0x68   : > { %3928 = vsyncadd (%p4705_p6), [#allocation3], 4294967040 }
  0x69   : > { %3930 = dma.done.wait (%p4706_p9), [#allocation6], 2560   ;;  %p4707_p10 = pmov %p4704_p0 }
  0x6a   : > { %v290_v0 = vlaneseq  ;;  %v3960_v1 = vmov 1983009808   ;;  %vm319_vm0 = vcmask 326656   ;;  %v264_v6 = vld [vmem:[#allocation5 + $0x28] sm:$0xff]  ;;  %v265_v7 = vld [vmem:[#allocation5 + $0x30] sm:$0xff]  ;;  %v266_v8 = vld [vmem:[#allocation5 + $0x38] sm:$0xff] }
  0x6b   : > { %3932 = vsyncadd (%p4707_p10), [#allocation6], 4294964736  ;;  %v288_v2 = vunpack.c.l.s4 %v3960_v1  ;;  %v3634_v9 = vpack.c.bf16 %v265_v7, %v264_v6  ;;  %v267_v10 = vld [vmem:[#allocation5 + $0x40] sm:$0xff]  ;;  %v248_v11 = vld [vmem:[#allocation2] sm:$0x3]  ;;  %v3961_v38 = vmov 0.0|0.0  }
  0x6c   : > { %v4143_v4 = vshrl.u32 %v290_v0, 7  ;;  %vm4147_vm1 = vmpackc.low %vm319_vm0, %vm319_vm0  ;;  %v3640_v13 = vpack.c.bf16 %v267_v10, %v266_v8  ;;  %v249_v14 = vld [vmem:[#allocation2 + $0x2] sm:$0x3]  ;;  %v250_v15 = vld [vmem:[#allocation2 + $0x4] sm:$0x3]  ;;  %s3368_s30 = sshll.u32 %s4019_s22, 3 }
  0x6d   : > { %v289_v3 = vunpack.c.0.s8 %v288_v2  ;;  %v251_v16 = vld [vmem:[#allocation2 + $0x6] sm:$0x3]  ;;  %3636 = vmatprep.subr.msk.bf16.mxu0 %vm4147_vm1, %v3634_v9  ;;  %v285_v17 = vcombine.low %v248_v11, %v249_v14  ;;  %v252_v22 = vld [vmem:[#allocation2 + $0x8] sm:$0x3]  ;;  %v253_v25 = vld [vmem:[#allocation2 + $0xa] sm:$0x3] }
  0x6e   : > { %v286_v18 = vcombine.low %v250_v15, %v251_v16  ;;  %3639 = vmatpush3.bf16.xpose.msk.msra.mxu0 %vm4147_vm1, %v3634_v9  ;;  %v415_v23 = vld [vmem:[#allocation5 + $0x50] sm:$0xff]  ;;  %v416_v24 = vld [vmem:[#allocation5 + $0x58] sm:$0xff]  ;;  %v268_v29 = vld [vmem:[#allocation5 + $0x48] sm:$0xff]  ;;  %v302_v30 = vcombine.low %v252_v22, %v253_v25  ;;  %vm3962_vm2 = vmmov 0   ;;  %v3963_v39 = vmov 0.0   ;;  %s258_s8 = scalar_lea.vmem [#allocation2], %s3368_s30 }
  0x6f   : > { %v4152_v12 = vsub.s32 %v289_v3, %v4143_v4  ;;  %3642 = vmatprep.subr.msk.bf16.mxu0 %vm4147_vm1, %v3640_v13  ;;  %v254_v26 = vld [vmem:[#allocation2 + $0xc] sm:$0x3]  ;;  %v255_v27 = vld [vmem:[#allocation2 + $0xe] sm:$0x3]  ;;  %v3646_v28 = vpack.c.bf16 %v416_v24, %v415_v23  ;;  %v518_v34 = vld [vmem:[#allocation5] sm:$0xff]  ;;  %v648_v57 = vadd.s32 1, %v4143_v4 }
  0x70   : > { %v303_v31 = vcombine.low %v254_v26, %v255_v27  ;;  %v519_v35 = vld [vmem:[#allocation5 + $0x8] sm:$0xff]  ;;  %v520_v40 = vld [vmem:[#allocation5 + $0x10] sm:$0xff]  ;;  %v521_v41 = vld [vmem:[#allocation5 + $0x18] sm:$0xff]  ;;  %v643_v58 = vand.u32 127, %v290_v0  ;;  %v644_v59 = vmul.u32 4, %v4143_v4  ;;  %v641_v63 = vadd.s32 8, %v4143_v4 }
  0x71   : > { %v293_v19 = vrot.slane %v285_v17, %v4152_v12  ;;  %v300_v20 = vrot.slane %v286_v18, %v4152_v12  ;;  %3648 = vmatprep.subr.msk.bf16.mxu1 %vm4147_vm1, %v3646_v28  ;;  %v310_v32 = vrot.slane %v302_v30, %v4152_v12  ;;  %v3659_v37 = vpack.c.bf16 %v519_v35, %v518_v34  ;;  %v259_v42 = vld [vmem:[%s258_s8] sm:$0x3]  ;;  %v260_v44 = vld [vmem:[%s258_s8 + $0x2] sm:$0x3]  ;;  %v261_v45 = vld [vmem:[%s258_s8 + $0x4] sm:$0x3] }
  0x72   : > { %3651 = vmatpush3.bf16.xpose.msk.msra.mxu1 %vm4147_vm1, %v3646_v28  ;;  %v317_v33 = vrot.slane %v303_v31, %v4152_v12  ;;  %v3663_v43 = vpack.c.bf16 %v521_v41, %v520_v40  ;;  %v262_v46 = vld [vmem:[%s258_s8 + $0x6] sm:$0x3]  ;;  %v534_v47 = vcombine.low %v259_v42, %v260_v44  ;;  %v522_v51 = vld [vmem:[#allocation5 + $0x20] sm:$0xff]  ;;  %v418_v54 = vld [vmem:[#allocation5 + $0x68] sm:$0xff]  ;;  %v650_v60 = vmul.u32 4, %v648_v57  ;;  %s244_s17 = sand.u32 1, %s3943_s19  }
  0x73   : > { %v301_v21 = vcombine.low %v293_v19, %v300_v20  ;;  %v535_v48 = vcombine.low %v261_v45, %v262_v46  ;;  %v417_v53 = vld [vmem:[#allocation5 + $0x60] sm:$0xff]  ;;  %v419_v56 = vld [vmem:[#allocation5 + $0x70] sm:$0xff]  ;;  %v3964_v61 = vmov 1966171168   ;;  %vm4209_vm3 = vcmp.ge.s32.totalorder %v643_v58, %v644_v59  ;;  %s3294_s7 = sshll.u32 %s244_s17, 3  ;;  %s3369_s9 = sshll.u32 %s4019_s22, 7 }
  0x74   : > { %v318_v36 = vcombine.low %v310_v32, %v317_v33  ;;  %v542_v49 = vrot.slane %v534_v47, %v4152_v12  ;;  %v3652_v55 = vpack.c.bf16 %v418_v54, %v417_v53  ;;  %v754_v62 = vunpack.c.l.s4 %v3964_v61  ;;  %v3298_v1 = vld [vmem:[%s4685_s2 + $0x1] ss:$0 sm:$0xff]  ;;  %v3315_v2 = vld [vmem:[%s4685_s2] ss:$0 sm:$0xff]  ;;  %s246_s10 = scalar_lea.vmem [#allocation8], %s3294_s7  ;;  %s4640_s30 = scalar_lea.hbm %s4688_s5, %s3369_s9 }
  0x75   : > { %3458 = vmatprep.mubr.msk.f32.mxu0 %vm319_vm0, %v301_v21  ;;  %3471 = vmatprep.mubr.msk.f32.mxu1 %vm319_vm0, %v301_v21  ;;  %v549_v50 = vrot.slane %v535_v48, %v4152_v12  ;;  %vm4213_vm4 = vcmp.lt.s32.totalorder %v643_v58, %v650_v60  ;;  %v4218_v7 = vsub.s32 0, %v4143_v4  ;;  %v649_v10 = vadd.s32 1, %v641_v63  ;;  %s3202_s26 = sshll.u32 %s246_s10, 4  ;;  %s4642_s8 = scalar_lea.sflag [#allocation4], %s244_s17  ;;  %s4635_s26 = int_to_ptr.vmem [resolvable:$true] %s3202_s26 }
  0x76   : > { %3645 = vmatpush3.bf16.xpose.msk.msra.mxu0 %vm4147_vm1, %v3640_v13  ;;  %3654 = vmatprep.subr.msk.bf16.mxu1 %vm4147_vm1, %v3652_v55  ;;  %v755_v0 = vunpack.c.0.s8 %v754_v62  ;;  %vm654_vm5 = vmand %vm4209_vm3, %vm4213_vm4  ;;  %v4225_v11 = vsub.s32 1, %v4143_v4  ;;  %vm889_vm6 = vcmask 1041409   ;;  %vm891_vm7 = vcmask 1042434   ;;  %s3881_s22 = scalar_lea.vmem %s4635_s26, 128  ;;  %p4718_p13 = scmp.ne.s32.totalorder %s4695_s28, 0 }
  0x77   : > { %3456 = vmatprep.subr.msk.mxu0 %vm319_vm0, %v268_v29  ;;  %v550_v52 = vcombine.low %v542_v49, %v549_v50  ;;  %v645_v17 = vmul.u32 4, %v641_v63  ;;  %vm893_vm8 = vcmask 1043459   ;;  %v3322_v20 = vsel %vm654_vm5, 1.0, %v3963_v39  ;;  %p3882_p12 = scmp.ne.s32.totalorder %s4635_s26, %s3881_s22  ;;  %s3965_s16 = smov [#allocation8]  }
  0x78   : > { %v4229_v16 = vsub.s32 %v755_v0, %v4143_v4  ;;  %vm956_vm9 = vcmask 1044484   ;;  %vm958_vm10 = vcmask 1045509   ;;  %vm960_vm11 = vcmask 1046534   ;;  %s3885_s11 = sshll.u32 %s3965_s16, 4  ;;  %s3886_s11 = int_to_ptr.vmem [resolvable:$false] %s3885_s11 }
  0x79   : > { %v651_v21 = vmul.u32 4, %v649_v10  ;;  %vm962_vm12 = vcmask 1047559   ;;  %v752_v26 = vcombine.high %v3322_v20, %v3322_v20  ;;  %vm4236_vm13 = vcmp.ge.s32.totalorder %v643_v58, %v645_v17  ;;  %p3883_p1 = pnand %p3882_p12, %p4718_p13  ;;  %s3887_s12 = scalar_lea.vmem %s3886_s11, 256 }
  0x7a   : > { %3657 = vmatpush3.bf16.xpose.msk.msra.mxu1 %vm4147_vm1, %v3652_v55  ;;  %v759_v4 = vrot.slane %v3322_v20, %v4229_v16  ;;  %vm1066_vm3 = vcmask 64512   ;;  %vm1902_vm4 = vcmask 322560   ;;  %p3888_p3 = scmp.lt.s32.totalorder %s4635_s26, %s3886_s11  ;;  %p3889_p4 = scmp.lt.s32.totalorder %s3887_s12, %s3881_s22 }
  0x7b   : > { %3469 = vmatprep.subr.msk.mxu1 %vm319_vm0, %v419_v56  ;;  %vm4246_vm14 = vcmp.lt.s32.totalorder %v643_v58, %v651_v21  ;;  %v766_v45 = vrot.slane %v752_v26, %v4229_v16  ;;  %p3884_p2 = pneg %p3883_p1 }
  0x7c   : > { %vm655_vm15 = vmand %vm4236_vm13, %vm4246_vm14  ;;  %v767_v3 = vcombine.high %v759_v4, %v759_v4  ;;  %p3890_p7 = por %p3889_p4, %p3888_p3 }
  0x7d   : > { %v3323_v62 = vsel %vm655_vm15, 1.0, %v3963_v39  ;;  %v768_v0 = vcombine.high %v766_v45, %v766_v45 }
  0x7e   : > { %3457 = vmatpush3.xpose.msk.msra.mxu0 %vm319_vm0, %v268_v29  ;;  %p3891_p8 = pnand %p3890_p7, %p3884_p2 }
  0x7f   : > { %3658 = vmatprep.subr.bf16.mxu0 %v3961_v38  ;;  %v796_v17 = vrot.slane %v768_v0, %v4229_v16 }
  0x81   : > { %3459 = vmatmul.mubr.msk.f32.vlgmr.msra.gmra.mrb[0].mxu0 %vm319_vm0, %v318_v36 }
  0x82   : > { %3661 = vmatpush3.bf16.xpose.msk.msra.mxu0 %vm4147_vm1, %v3659_v37  ;;  %3484 = vmatprep.mubr.msk.f32.mxu0 %vm3962_vm2, %v3963_v39 }
  0x83   : > { %3662 = vmatprep.subr.bf16.mxu0 %v3961_v38  ;;  %3470 = vmatpush3.xpose.msk.msra.mxu1 %vm319_vm0, %v419_v56 }
  0x84   : > { %3674 = vmatprep.subr.mxu1 %v3963_v39 }
  0x86   : > { %3472 = vmatmul.mubr.msk.f32.vlgmr.msra.gmra.mrb[0].mxu1 %vm319_vm0, %v318_v36 }
  0x87   : > { %3495 = vmatprep.mubr.msk.f32.mxu1 %vm3962_vm2, %v3963_v39 }
  0x8a   : > { %3665 = vmatpush3.bf16.xpose.msk.msra.mxu0 %vm4147_vm1, %v3663_v43 }
  0x8b   : > { %3482 = vmatprep.subr.mxu0 %v3963_v39 }
  0x92   : > { %3483 = vmatpush3.xpose.msk.msra.mxu0 %vm319_vm0, %v522_v51 }
  0x93   : > { %3487 = vmatprep.subr.mxu0 %v3963_v39 }
  0x95   : > { %3485 = vmatmul.mubr.msk.f32.vlgmr.msra.gmra.mrb[2].mxu0 %vm319_vm0, %v550_v52 }
  0x96   : > { %3489 = vmatprep.mubr.msk.f32.mxu0 %vm3962_vm2, %v3963_v39 }
 0x154   : > { %v3460_v6 = vpop.f32.mrb[0].mxu0 }
 0x155   : > { %v411_v8 = vadd.f32 %v3460_v6, %v3298_v1  ;;  %v405_v9 = vpop.f32.mrb[1].mxu0  ;;  %v807_v6 = vrot.slane %v3323_v62, %v4229_v16 }
 0x156   : > { %v406_v13 = vadd.f32 %v3298_v1, %v405_v9 }
 0x157   : > { %v697_v14 = vcombine.high %v411_v8, %v411_v8  ;;  %v704_v15 = vrot.slane %v411_v8, %v4152_v12  ;;  %v815_v26 = vrot.slane %v807_v6, %v4229_v16 }
 0x158   : > { %v680_v18 = vcombine.high %v406_v13, %v406_v13  ;;  %v687_v19 = vrot.slane %v406_v13, %v4152_v12  ;;  %v775_v13 = vrot.slane %v759_v4, %v4229_v16 }
 0x159   : > { %v711_v22 = vrot.slane %v697_v14, %v4152_v12  ;;  %v712_v25 = vcombine.high %v704_v15, %v704_v15  ;;  %v940_v42 = vrot.slane %v704_v15, %v4218_v7  ;;  %v1986_v47 = vrot.slane %v704_v15, %v4225_v11 }
 0x15a   : > { %v694_v23 = vrot.slane %v680_v18, %v4152_v12  ;;  %v695_v24 = vcombine.high %v687_v19, %v687_v19  ;;  %v924_v29 = vrot.slane %v687_v19, %v4218_v7  ;;  %v1970_v32 = vrot.slane %v687_v19, %v4225_v11 }
 0x15b   : > { %v713_v36 = vcombine.high %v711_v22, %v711_v22  ;;  %v944_v46 = vrot.slane %v712_v25, %v4218_v7  ;;  %v948_v50 = vrot.slane %v711_v22, %v4218_v7  ;;  %v1990_v51 = vrot.slane %v712_v25, %v4225_v11 }
 0x15c   : > { %v696_v28 = vcombine.high %v694_v23, %v694_v23  ;;  %v928_v30 = vrot.slane %v695_v24, %v4218_v7  ;;  %v932_v31 = vrot.slane %v694_v23, %v4218_v7  ;;  %v1974_v33 = vrot.slane %v695_v24, %v4225_v11 }
 0x15d   : > { %v1978_v34 = vrot.slane %v694_v23, %v4225_v11  ;;  %v1994_v54 = vrot.slane %v711_v22, %v4225_v11  ;;  %v952_v55 = vrot.slane %v713_v36, %v4218_v7  ;;  %v1998_v59 = vrot.slane %v713_v36, %v4225_v11 }
 0x15e   : > { %v936_v37 = vrot.slane %v696_v28, %v4218_v7  ;;  %v953_v40 = vsel %vm889_vm6, %v928_v30, %v924_v29  ;;  %v1982_v41 = vrot.slane %v696_v28, %v4225_v11  ;;  %v1999_v44 = vsel %vm889_vm6, %v1974_v33, %v1970_v32 }
 0x15f   : > { %v954_v43 = vsel %vm891_vm7, %v932_v31, %v953_v40  ;;  %v2000_v48 = vsel %vm891_vm7, %v1978_v34, %v1999_v44  ;;  %v789_v14 = vrot.slane %v767_v3, %v4229_v16  ;;  %v782_v15 = vrot.slane %v766_v45, %v4229_v16 }
 0x160   : > { %v955_v49 = vsel %vm893_vm8, %v936_v37, %v954_v43  ;;  %v2001_v53 = vsel %vm893_vm8, %v1982_v41, %v2000_v48  ;;  %v808_v19 = vcombine.high %v807_v6, %v807_v6  ;;  %v797_v22 = vcombine.high %v775_v13, %v775_v13 }
 0x161   : > { %v957_v52 = vsel %vm956_vm9, %v940_v42, %v955_v49  ;;  %v2002_v57 = vsel %vm956_vm9, %v1986_v47, %v2001_v53  ;;  %v799_v23 = vcombine.high %v789_v14, %v789_v14  ;;  %v798_v24 = vcombine.high %v782_v15, %v782_v15 }
 0x162   : > { %v959_v56 = vsel %vm958_vm10, %v944_v46, %v957_v52  ;;  %v2003_v60 = vsel %vm958_vm10, %v1990_v51, %v2002_v57  ;;  %v800_v25 = vcombine.high %v796_v17, %v796_v17  ;;  %v4298_v28 = vrot.slane %v775_v13, %v4218_v7  ;;  %v3307_v13 = vld [vmem:[%s4685_s2 + $0x2] ss:$0 sm:$0xff] }
 0x163   : > { %v961_v58 = vsel %vm960_vm11, %v948_v50, %v959_v56  ;;  %v2004_v63 = vsel %vm960_vm11, %v1994_v54, %v2003_v60  ;;  %v822_v29 = vrot.slane %v808_v19, %v4229_v16  ;;  %v4304_v32 = vrot.slane %v789_v14, %v4218_v7  ;;  %v3473_v14 = vpop.f32.mrb[0].mxu1 }
 0x164   : > { %v963_v61 = vsel %vm962_vm12, %v952_v55, %v961_v58  ;;  %v4282_v1 = vsel %vm962_vm12, %v1998_v59, %v2004_v63  ;;  %v4307_v33 = vrot.slane %v782_v15, %v4218_v7  ;;  %v4314_v41 = vrot.slane %v796_v17, %v4218_v7  ;;  %v509_v17 = vpop.f32.mrb[1].mxu1 }
 0x165   : > { %3488 = vmatpush3.xpose.msk.msra.mxu0 %vm319_vm0, %v963_v61  ;;  %3675 = vmatpush3.xpose.msk.msra.mxu1 %vm319_vm0, %v963_v61  ;;  %v4317_v42 = vrot.slane %v797_v22, %v4218_v7  ;;  %v4320_v43 = vrot.slane %v799_v23, %v4218_v7  ;;  %v4329_v50 = vrot.slane %v798_v24, %v4218_v7 }
 0x166   : > { %3504 = vmatprep.subr.mxu0 %v3963_v39  ;;  %3509 = vmatprep.subr.mxu1 %v3963_v39  ;;  %v4332_v51 = vrot.slane %v800_v25, %v4218_v7  ;;  %v4345_v60 = vrot.slane %v815_v26, %v4218_v7  ;;  %v4348_v61 = vrot.slane %v822_v29, %v4218_v7 }
 0x167   : > { %v515_v15 = vadd.f32 %v3473_v14, %v3307_v13 }
 0x168   : > { %v634_v8 = vpop.f32.mrb[2].mxu0 }
 0x169   : > { %v635_v9 = vadd.f32 %v3315_v2, %v634_v8  ;;  %v3486_v10 = vpop.f32.mrb[3].mxu0  ;;  %v733_v19 = vcombine.high %v515_v15, %v515_v15 }
 0x16b   : > { %v638_v18 = vmul.f32 0.5, %v635_v9  ;;  %v747_v23 = vrot.slane %v733_v19, %v4152_v12 }
 0x16d   : > { %v661_v20 = vcombine.high %v638_v18, %v638_v18  ;;  %v668_v21 = vrot.slane %v638_v18, %v4152_v12  ;;  %v510_v18 = vadd.f32 %v3307_v13, %v509_v17  ;;  %v749_v29 = vcombine.high %v747_v23, %v747_v23 }
 0x16f   : > { %v675_v27 = vrot.slane %v661_v20, %v4152_v12  ;;  %v676_v4 = vcombine.high %v668_v21, %v668_v21  ;;  %v876_v30 = vrot.slane %v668_v21, %v4218_v7  ;;  %v1925_v31 = vrot.slane %v668_v21, %v4225_v11 }
 0x170   : > { %v740_v20 = vrot.slane %v515_v15, %v4152_v12  ;;  %v716_v21 = vcombine.high %v510_v18, %v510_v18  ;;  %v723_v22 = vrot.slane %v510_v18, %v4152_v12 }
 0x171   : > { %v677_v34 = vcombine.high %v675_v27, %v675_v27  ;;  %v880_v35 = vrot.slane %v676_v4, %v4218_v7  ;;  %v884_v36 = vrot.slane %v675_v27, %v4218_v7  ;;  %v1929_v37 = vrot.slane %v676_v4, %v4225_v11 }
 0x172   : > { %v1933_v40 = vrot.slane %v675_v27, %v4225_v11  ;;  %v748_v24 = vcombine.high %v740_v20, %v740_v20  ;;  %v730_v25 = vrot.slane %v716_v21, %v4152_v12  ;;  %v731_v26 = vcombine.high %v723_v22, %v723_v22 }
 0x173   : > { %v888_v44 = vrot.slane %v677_v34, %v4218_v7  ;;  %v890_v45 = vsel %vm889_vm6, %v880_v35, %v876_v30  ;;  %v1937_v46 = vrot.slane %v677_v34, %v4225_v11  ;;  %v1938_v47 = vsel %vm889_vm6, %v1929_v37, %v1925_v31 }
 0x174   : > { %v892_v48 = vsel %vm891_vm7, %v884_v36, %v890_v45  ;;  %v1939_v49 = vsel %vm891_vm7, %v1933_v40, %v1938_v47  ;;  %v1125_v27 = vrot.slane %v723_v22, %v4218_v7  ;;  %v2166_v4 = vrot.slane %v723_v22, %v4225_v11 }
 0x175   : > { %v894_v52 = vsel %vm893_vm8, %v888_v44, %v892_v48  ;;  %v4336_v53 = vsel %vm893_vm8, %v1937_v46, %v1939_v49  ;;  %v732_v30 = vcombine.high %v730_v25, %v730_v25  ;;  %v1129_v31 = vrot.slane %v731_v26, %v4218_v7 }
 0x176   : > { %v896_v54 = vmul.f32 %v894_v52, %v4298_v28  ;;  %v897_v55 = vmul.f32 %v894_v52, %v4304_v32  ;;  %v900_v56 = vmul.f32 %v894_v52, %v4307_v33  ;;  %v901_v57 = vmul.f32 %v894_v52, %v4314_v41 }
 0x177   : > { %v898_v58 = vmul.f32 %v894_v52, %v4317_v42  ;;  %v899_v59 = vmul.f32 %v894_v52, %v4320_v43  ;;  %v902_v2 = vmul.f32 %v894_v52, %v4329_v50  ;;  %v903_v3 = vmul.f32 %v894_v52, %v4332_v51 }
 0x178   : > { %v916_v62 = vcombine.low %v896_v54, %v897_v55  ;;  %v918_v63 = vcombine.low %v900_v56, %v901_v57  ;;  %v904_v8 = vmul.f32 %v894_v52, %v4345_v60  ;;  %v905_v9 = vmul.f32 %v894_v52, %v4348_v61 }
 0x179   : > { %v917_v0 = vcombine.low %v898_v58, %v899_v59  ;;  %v919_v6 = vcombine.low %v902_v2, %v903_v3  ;;  %v1133_v34 = vrot.slane %v730_v25, %v4218_v7  ;;  %v1141_v35 = vrot.slane %v740_v20, %v4218_v7 }
 0x17a   : > { %3490 = vmatmul.mubr.msk.f32.vlgmr.msra.gmra.mrb[4].mxu0 %vm319_vm0, %v916_v62  ;;  %3496 = vmatmul.mubr.msk.f32.vlgmr.msra.gmra.mrb[2].mxu1 %vm319_vm0, %v918_v63  ;;  %v920_v10 = vcombine.low %v904_v8, %v905_v9  ;;  %v2182_v36 = vrot.slane %v740_v20, %v4225_v11  ;;  %v2170_v37 = vrot.slane %v731_v26, %v4225_v11 }
 0x17b   : > { %3492 = vmatprep.mubr.msk.f32.mxu0 %vm3962_vm2, %v3963_v39  ;;  %3498 = vmatprep.mubr.msk.f32.mxu1 %vm3962_vm2, %v3963_v39  ;;  %v2174_v40 = vrot.slane %v730_v25, %v4225_v11  ;;  %v1145_v44 = vrot.slane %v748_v24, %v4218_v7  ;;  %v1137_v45 = vrot.slane %v732_v30, %v4218_v7 }
 0x17c   : > { %v1154_v46 = vsel %vm889_vm6, %v1129_v31, %v1125_v27  ;;  %v2178_v47 = vrot.slane %v732_v30, %v4225_v11  ;;  %v1149_v48 = vrot.slane %v747_v23, %v4218_v7  ;;  %v2186_v49 = vrot.slane %v748_v24, %v4225_v11 }
 0x17d   : > { %v1155_v52 = vsel %vm891_vm7, %v1133_v34, %v1154_v46  ;;  %v2195_v54 = vsel %vm889_vm6, %v2170_v37, %v2166_v4  ;;  %v1153_v55 = vrot.slane %v749_v29, %v4218_v7  ;;  %v2190_v56 = vrot.slane %v747_v23, %v4225_v11 }
 0x17e   : > { %3493 = vmatmul.mubr.msk.f32.gmra.mrb[6].mxu0 %vm319_vm0, %v917_v0  ;;  %3499 = vmatmul.mubr.msk.f32.gmra.mrb[4].mxu1 %vm319_vm0, %v919_v6  ;;  %v1156_v57 = vsel %vm893_vm8, %v1137_v45, %v1155_v52  ;;  %v2196_v58 = vsel %vm891_vm7, %v2174_v40, %v2195_v54  ;;  %v2194_v59 = vrot.slane %v749_v29, %v4225_v11 }
 0x17f   : > { %3501 = vmatprep.mubr.msk.f32.mxu1 %vm3962_vm2, %v3963_v39  ;;  %3506 = vmatprep.mubr.msk.f32.mxu0 %vm3962_vm2, %v3963_v39  ;;  %v1157_v62 = vsel %vm956_vm9, %v1141_v35, %v1156_v57  ;;  %v2197_v63 = vsel %vm893_vm8, %v2178_v47, %v2196_v58 }
 0x180   : > { %v1158_v2 = vsel %vm958_vm10, %v1145_v44, %v1157_v62  ;;  %v2198_v3 = vsel %vm956_vm9, %v2182_v36, %v2197_v63 }
 0x181   : > { %v1159_v0 = vsel %vm960_vm11, %v1149_v48, %v1158_v2  ;;  %v2199_v6 = vsel %vm958_vm10, %v2186_v49, %v2198_v3 }
 0x182   : > { %3502 = vmatmul.mubr.msk.f32.gmra.mrb[6].mxu1 %vm319_vm0, %v920_v10  ;;  %v4404_v8 = vsel %vm962_vm12, %v1153_v55, %v1159_v0  ;;  %v2200_v9 = vsel %vm960_vm11, %v2190_v56, %v2199_v6 }
 0x183   : > { %3511 = vmatprep.mubr.msk.f32.mxu1 %vm3962_vm2, %v3963_v39  ;;  %v4408_v10 = vsel %vm962_vm12, %v2194_v59, %v2200_v9  ;;  %v1162_v11 = vmul.f32 %v4404_v8, %v4298_v28  ;;  %v1163_v13 = vmul.f32 %v4404_v8, %v4304_v32 }
 0x185   : > { %3505 = vmatpush3.msra.mxu0 %v1162_v11  ;;  %3510 = vmatpush3.msra.mxu1 %v1163_v13 }
 0x186   : > { %3514 = vmatprep.subr.mxu0 %v3963_v39  ;;  %3519 = vmatprep.subr.mxu1 %v3963_v39 }
 0x24d   : > { %v1042_v14 = vpop.f32.mrb[4].mxu0  ;;  %v1052_v15 = vpop.f32.mrb[2].mxu1 }
 0x24e   : > { %v3491_v17 = vpop.f32.mrb[5].mxu0  ;;  %v3497_v18 = vpop.f32.mrb[3].mxu1  ;;  %v1073_v19 = vsel %vm1066_vm3, %v1052_v15, -inf  ;;  %v1067_v20 = vsel %vm1066_vm3, %v1042_v14, -inf }
 0x24f   : > { %1074 = vmax.xlane.f32.xlu1 %v1073_v19  ;;  %1068 = vmax.xlane.f32.xlu0 %v1067_v20  ;;  %v1164_v18 = vmul.f32 %v4404_v8, %v4317_v42 }
 0x251   : > { %v1047_v21 = vpop.f32.mrb[6].mxu0  ;;  %v1057_v22 = vpop.f32.mrb[4].mxu1 }
 0x252   : > { %v3494_v23 = vpop.f32.mrb[7].mxu0  ;;  %v3500_v24 = vpop.f32.mrb[5].mxu1  ;;  %v1076_v25 = vsel %vm1066_vm3, %v1057_v22, -inf  ;;  %v1070_v26 = vsel %vm1066_vm3, %v1047_v21, -inf }
 0x253   : > { %1077 = vmax.xlane.f32.xlu1 %v1076_v25  ;;  %1071 = vmax.xlane.f32.xlu0 %v1070_v26  ;;  %v1166_v24 = vmul.f32 %v4404_v8, %v4307_v33 }
 0x255   : > { %v1062_v27 = vpop.f32.mrb[6].mxu1 }
 0x256   : > { %v3503_v4 = vpop.f32.mrb[7].mxu1  ;;  %v1079_v29 = vsel %vm1066_vm3, %v1062_v27, -inf }
 0x257   : > { %1080 = vmax.xlane.f32.xlu0 %v1079_v29  ;;  %v1167_v4 = vmul.f32 %v4404_v8, %v4314_v41  ;;  %v1168_v29 = vmul.f32 %v4404_v8, %v4329_v50 }
 0x2dc   : > { %v1075_v30 = vpop.xlane.xlu1 %1074  ;;  %v1069_v31 = vpop.xlane.xlu0 %1068 }
 0x2dd   : > { %v1084_v34 = vsub.f32 %v1052_v15, %v1075_v30  ;;  %v1082_v35 = vsub.f32 %v1042_v14, %v1069_v31 }
 0x2df   : > { %v1087_v36 = vmul.f32 1.442695, %v1082_v35  ;;  %v1091_v37 = vmul.f32 1.442695, %v1084_v34  ;;  %v1169_v35 = vmul.f32 %v4404_v8, %v4332_v51 }
 0x2e0   : > { %v1078_v40 = vpop.xlane.xlu1 %1077  ;;  %v1072_v44 = vpop.xlane.xlu0 %1071 }
 0x2e1   : > { %v1085_v45 = vsub.f32 %v1057_v22, %v1078_v40  ;;  %v1083_v46 = vsub.f32 %v1047_v21, %v1072_v44  ;;  %3757 = vpow2.f32 %v1087_v36  ;;  %v1165_v21 = vmul.f32 %v4404_v8, %v4320_v43 }
 0x2e2   : > { %3759 = vpow2.f32 %v1091_v37  ;;  %v1170_v36 = vmul.f32 %v4404_v8, %v4345_v60  ;;  %v1171_v44 = vmul.f32 %v4404_v8, %v4348_v61  ;;  %v1942_v8 = vmul.f32 %v4336_v53, %v4298_v28 }
 0x2e3   : > { %v1089_v47 = vmul.f32 1.442695, %v1083_v46  ;;  %v1093_v48 = vmul.f32 1.442695, %v1085_v45  ;;  %v2203_v46 = vmul.f32 %v4408_v10, %v4298_v28  ;;  %v1944_v28 = vmul.f32 %v4336_v53, %v4317_v42 }
 0x2e4   : > { %v1081_v49 = vpop.xlane.xlu0 %1080 }
 0x2e5   : > { %v1086_v52 = vsub.f32 %v1062_v27, %v1081_v49  ;;  %3761 = vpow2.f32 %v1089_v47  ;;  %v1943_v47 = vmul.f32 %v4336_v53, %v4304_v32  ;;  %v1945_v49 = vmul.f32 %v4336_v53, %v4320_v43 }
 0x2e6   : > { %3763 = vpow2.f32 %v1093_v48 }
 0x2e7   : > { %v1095_v54 = vmul.f32 1.442695, %v1086_v52  ;;  %v1962_v48 = vcombine.low %v1942_v8, %v1943_v47  ;;  %v2208_v52 = vmul.f32 %v4408_v10, %v4314_v41 }
 0x2e9   : > { %3765 = vpow2.f32 %v1095_v54  ;;  %v1946_v54 = vmul.f32 %v4336_v53, %v4307_v33 }
 0x2eb   : > { %v3758_v55 = vpop.eup %3757 }
 0x2ec   : > { %v1097_v56 = vsel %vm1066_vm3, %v3758_v55, 0.0  ;;  %v3760_v57 = vpop.eup %3759 }
 0x2ed   : > { %1098 = vadd.xlane.f32.xlu1 %v1097_v56  ;;  %v1103_v59 = vsel %vm1066_vm3, %v3760_v57, 0.0 }
 0x2ef   : > { %v3762_v58 = vpop.eup %3761 }
 0x2f0   : > { %v1100_v62 = vsel %vm1066_vm3, %v3762_v58, 0.0  ;;  %v3764_v63 = vpop.eup %3763 }
 0x2f1   : > { %1104 = vadd.xlane.f32.xlu1 %v1103_v59  ;;  %1101 = vadd.xlane.f32.xlu0 %v1100_v62  ;;  %v1106_v0 = vsel %vm1066_vm3, %v3764_v63, 0.0  ;;  %v1950_v59 = vmul.f32 %v4336_v53, %v4345_v60  ;;  %v1951_v62 = vmul.f32 %v4336_v53, %v4348_v61 }
 0x2f3   : > { %v3766_v2 = vpop.eup %3765 }
 0x2f4   : > { %v1109_v3 = vsel %vm1066_vm3, %v3766_v2, 0.0 }
 0x2f5   : > { %1107 = vadd.xlane.f32.xlu0 %v1106_v0  ;;  %1110 = vadd.xlane.f32.xlu1 %v1109_v3 }
 0x37a   : > { %v1099_v6 = vpop.xlane.xlu1 %1098 }
 0x37b   : > { %3767 = vrcp.f32 %v1099_v6 }
 0x37e   : > { %v1105_v9 = vpop.xlane.xlu1 %1104  ;;  %v1102_v11 = vpop.xlane.xlu0 %1101 }
 0x37f   : > { %3769 = vrcp.f32 %v1105_v9 }
 0x380   : > { %3771 = vrcp.f32 %v1102_v11 }
 0x382   : > { %v1108_v13 = vpop.xlane.xlu0 %1107  ;;  %v1111_v15 = vpop.xlane.xlu1 %1110 }
 0x383   : > { %3773 = vrcp.f32 %v1108_v13 }
 0x384   : > { %3775 = vrcp.f32 %v1111_v15 }
 0x385   : > { %v3768_v14 = vpop.eup %3767 }
 0x386   : > { %v1113_v17 = vmul.f32 %v3768_v14, %v3758_v55  ;;  %v1947_v55 = vmul.f32 %v4336_v53, %v4314_v41 }
 0x388   : > { %v1177_v19 = vcombine.high %v1113_v17, %v1113_v17  ;;  %3507 = vmatmul.mubr.msk.f32.vlgmr.msra.gmra.mrb[8].mxu0 %vm1066_vm3, %v1113_v17  ;;  %v1964_v56 = vcombine.low %v1946_v54, %v1947_v55 }
 0x389   : > { %v3770_v20 = vpop.eup %3769  ;;  %3515 = vmatpush3.msra.mxu0 %v1164_v18  ;;  %3516 = vmatprep.mubr.msk.f32.mxu0 %vm3962_vm2, %v3963_v39 }
 0x38a   : > { %v3772_v22 = vpop.eup %3771  ;;  %3512 = vmatmul.mubr.msk.f32.vlgmr.msra.gmra.mrb[8].mxu1 %vm1066_vm3, %v1177_v19  ;;  %3524 = vmatprep.subr.mxu0 %v3963_v39  ;;  %v1117_v25 = vmul.f32 %v3770_v20, %v3760_v57  ;;  %v1948_v57 = vmul.f32 %v4336_v53, %v4329_v50 }
 0x38b   : > { %v1115_v23 = vmul.f32 %v3772_v22, %v3762_v58  ;;  %3520 = vmatpush3.msra.mxu1 %v1165_v21  ;;  %3521 = vmatprep.mubr.msk.f32.mxu1 %vm3962_vm2, %v3963_v39  ;;  %v1949_v58 = vmul.f32 %v4336_v53, %v4332_v51 }
 0x38c   : > { %3529 = vmatprep.subr.mxu1 %v3963_v39  ;;  %v1179_v31 = vcombine.high %v1117_v25, %v1117_v25 }
 0x38d   : > { %3517 = vmatmul.mubr.msk.f32.vlgmr.msra.gmra.mrb[10].mxu0 %vm1066_vm3, %v1115_v23  ;;  %v1178_v26 = vcombine.high %v1115_v23, %v1115_v23  ;;  %v3774_v27 = vpop.eup %3773  ;;  %v1965_v41 = vcombine.low %v1948_v57, %v1949_v58 }
 0x38e   : > { %3525 = vmatpush3.msra.mxu0 %v1166_v24  ;;  %3526 = vmatprep.mubr.msk.f32.mxu0 %vm3962_vm2, %v3963_v39  ;;  %v1119_v30 = vmul.f32 %v3774_v27, %v3764_v63  ;;  %v3776_v34 = vpop.eup %3775  ;;  %v1966_v63 = vcombine.low %v1950_v59, %v1951_v62 }
 0x38f   : > { %3522 = vmatmul.mubr.msk.f32.vlgmr.msra.gmra.mrb[10].mxu1 %vm1066_vm3, %v1178_v26  ;;  %3534 = vmatprep.subr.mxu0 %v3963_v39  ;;  %v1121_v37 = vmul.f32 %v3776_v34, %v3766_v2 }
 0x390   : > { %3530 = vmatpush3.msra.mxu1 %v1167_v4  ;;  %3531 = vmatprep.mubr.msk.f32.mxu1 %vm3962_vm2, %v3963_v39  ;;  %v1180_v40 = vcombine.high %v1119_v30, %v1119_v30 }
 0x391   : > { %3527 = vmatmul.mubr.msk.f32.vlgmr.msra.gmra.mrb[12].mxu0 %vm1066_vm3, %v1117_v25  ;;  %3539 = vmatprep.subr.mxu1 %v3963_v39  ;;  %v1181_v45 = vcombine.high %v1121_v37, %v1121_v37 }
 0x392   : > { %3535 = vmatpush3.msra.mxu0 %v1168_v29  ;;  %3536 = vmatprep.mubr.msk.f32.mxu0 %vm3962_vm2, %v3963_v39 }
 0x393   : > { %3532 = vmatmul.mubr.msk.f32.vlgmr.msra.gmra.mrb[12].mxu1 %vm1066_vm3, %v1179_v31  ;;  %3544 = vmatprep.subr.mxu0 %v3963_v39 }
 0x394   : > { %3540 = vmatpush3.msra.mxu1 %v1169_v35  ;;  %3541 = vmatprep.mubr.msk.f32.mxu1 %vm3962_vm2, %v3963_v39 }
 0x395   : > { %3537 = vmatmul.mubr.msk.f32.vlgmr.msra.gmra.mrb[14].mxu0 %vm1066_vm3, %v1119_v30  ;;  %3549 = vmatprep.subr.mxu1 %v3963_v39 }
 0x396   : > { %3545 = vmatpush3.msra.mxu0 %v1170_v36  ;;  %3546 = vmatprep.mubr.msk.f32.mxu0 %vm3962_vm2, %v3963_v39 }
 0x397   : > { %3542 = vmatmul.mubr.msk.f32.vlgmr.msra.gmra.mrb[14].mxu1 %vm1066_vm3, %v1180_v40  ;;  %3554 = vmatprep.subr.mxu0 %v3963_v39 }
 0x398   : > { %3550 = vmatpush3.msra.mxu1 %v1171_v44  ;;  %3551 = vmatprep.mubr.msk.f32.mxu1 %vm3962_vm2, %v3963_v39 }
 0x399   : > { %3547 = vmatmul.mubr.msk.f32.vlgmr.msra.gmra.mrb[16].mxu0 %vm1066_vm3, %v1121_v37  ;;  %3571 = vmatprep.subr.mxu1 %v3963_v39 }
 0x39a   : > { %3556 = vmatprep.mubr.msk.f32.mxu0 %vm3962_vm2, %v3963_v39 }
 0x39b   : > { %3552 = vmatmul.mubr.msk.f32.vlgmr.msra.gmra.mrb[16].mxu1 %vm1066_vm3, %v1181_v45 }
 0x39c   : > { %3572 = vmatpush3.msra.mxu1 %v2203_v46  ;;  %3573 = vmatprep.mubr.msk.f32.mxu1 %vm3962_vm2, %v3963_v39 }
 0x39d   : > { %3555 = vmatpush3.xpose.msk.msra.mxu0 %vm319_vm0, %v4282_v1  ;;  %3576 = vmatprep.subr.mxu1 %v3963_v39  ;;  %v1963_v1 = vcombine.low %v1944_v28, %v1945_v49 }
 0x39e   : > { %3596 = vmatprep.subr.mxu0 %v3963_v39 }
 0x3a0   : > { %3557 = vmatmul.mubr.msk.f32.vlgmr.msra.gmra.mrb[18].mxu0 %vm319_vm0, %v1962_v48 }
 0x3a1   : > { %3597 = vmatpush3.msra.mxu0 %v2208_v52  ;;  %3559 = vmatprep.mubr.msk.f32.mxu0 %vm3962_vm2, %v3963_v39 }
 0x3a2   : > { %3606 = vmatprep.subr.mxu0 %v3963_v39 }
 0x3a4   : > { %3560 = vmatmul.mubr.msk.f32.gmra.mrb[20].mxu0 %vm319_vm0, %v1963_v1 }
 0x3a5   : > { %3562 = vmatprep.mubr.msk.f32.mxu0 %vm3962_vm2, %v3963_v39 }
 0x3a8   : > { %3563 = vmatmul.mubr.msk.f32.gmra.mrb[22].mxu0 %vm319_vm0, %v1964_v56 }
 0x3a9   : > { %3565 = vmatprep.mubr.msk.f32.mxu0 %vm3962_vm2, %v3963_v39 }
 0x3ac   : > { %3566 = vmatmul.mubr.msk.f32.gmra.mrb[24].mxu0 %vm319_vm0, %v1965_v41 }
 0x3ad   : > { %3568 = vmatprep.mubr.msk.f32.mxu0 %vm3962_vm2, %v3963_v39 }
 0x3b0   : > { %3569 = vmatmul.mubr.msk.f32.gmra.mrb[26].mxu0 %vm319_vm0, %v1966_v63 }
 0x3b1   : > { %3598 = vmatprep.mubr.msk.f32.mxu0 %vm3962_vm2, %v3963_v39 }
 0x45b   : > { %v1250_v2 = vpop.f32.mrb[8].mxu0 }
 0x45c   : > { %v3508_v3 = vpop.f32.mrb[9].mxu0  ;;  %v1903_v6 = vsel %vm1902_vm4, %v1250_v2, 0.0 }
 0x45d   : > { %v1322_v0 = vpop.f32.mrb[8].mxu1 }
 0x45e   : > { %v1904_v9 = vsel %vm1902_vm4, %v1322_v0, 0.0  ;;  %v3513_v53 = vpop.f32.mrb[9].mxu1 }
 0x45f   : > { %v1905_v11 = vadd.f32 %v1904_v9, %v1903_v6 }
 0x460   : > { %v1394_v13 = vpop.f32.mrb[10].mxu0 }
 0x461   : > { %v1906_v14 = vsel %vm1902_vm4, %v1394_v13, 0.0  ;;  %v3518_v15 = vpop.f32.mrb[11].mxu0 }
 0x462   : > { %v1907_v17 = vadd.f32 %v1906_v14, %v1905_v11  ;;  %v1466_v18 = vpop.f32.mrb[10].mxu1 }
 0x463   : > { %v1908_v19 = vsel %vm1902_vm4, %v1466_v18, 0.0  ;;  %v3523_v20 = vpop.f32.mrb[11].mxu1 }
 0x464   : > { %v1909_v21 = vadd.f32 %v1908_v19, %v1907_v17  ;;  %v1538_v22 = vpop.f32.mrb[12].mxu0 }
 0x465   : > { %v1910_v23 = vsel %vm1902_vm4, %v1538_v22, 0.0  ;;  %v3528_v24 = vpop.f32.mrb[13].mxu0 }
 0x466   : > { %v1911_v25 = vadd.f32 %v1910_v23, %v1909_v21  ;;  %v1610_v26 = vpop.f32.mrb[12].mxu1 }
 0x467   : > { %v1912_v27 = vsel %vm1902_vm4, %v1610_v26, 0.0  ;;  %v3533_v4 = vpop.f32.mrb[13].mxu1 }
 0x468   : > { %v1913_v29 = vadd.f32 %v1912_v27, %v1911_v25  ;;  %v1682_v30 = vpop.f32.mrb[14].mxu0 }
 0x469   : > { %v1914_v31 = vsel %vm1902_vm4, %v1682_v30, 0.0  ;;  %v3538_v34 = vpop.f32.mrb[15].mxu0 }
 0x46a   : > { %v1915_v35 = vadd.f32 %v1914_v31, %v1913_v29  ;;  %v1754_v36 = vpop.f32.mrb[14].mxu1 }
 0x46b   : > { %v1916_v37 = vsel %vm1902_vm4, %v1754_v36, 0.0  ;;  %v3543_v40 = vpop.f32.mrb[15].mxu1 }
 0x46c   : > { %v1917_v44 = vadd.f32 %v1916_v37, %v1915_v35  ;;  %v1826_v45 = vpop.f32.mrb[16].mxu0 }
 0x46d   : > { %v1918_v46 = vsel %vm1902_vm4, %v1826_v45, 0.0  ;;  %v3548_v8 = vpop.f32.mrb[17].mxu0 }
 0x46e   : > { %v1919_v47 = vadd.f32 %v1918_v46, %v1917_v44  ;;  %v1898_v48 = vpop.f32.mrb[16].mxu1 }
 0x46f   : > { %v1920_v28 = vsel %vm1902_vm4, %v1898_v48, 0.0  ;;  %v3553_v49 = vpop.f32.mrb[17].mxu1 }
 0x470   : > { %v4534_v52 = vadd.f32 %v1920_v28, %v1919_v47  ;;  %v2204_v28 = vmul.f32 %v4408_v10, %v4304_v32 }
 0x473   : > { %v2084_v1 = vpop.f32.mrb[18].mxu0 }
 0x474   : > { %v3558_v54 = vpop.f32.mrb[19].mxu0  ;;  %v2108_v55 = vsel %vm1066_vm3, %v2084_v1, -inf }
 0x475   : > { %2109 = vmax.xlane.f32.xlu0 %v2108_v55  ;;  %v2205_v55 = vmul.f32 %v4408_v10, %v4317_v42  ;;  %v2210_v42 = vmul.f32 %v4408_v10, %v4332_v51 }
 0x477   : > { %v2089_v56 = vpop.f32.mrb[20].mxu0 }
 0x478   : > { %v3561_v57 = vpop.f32.mrb[21].mxu0  ;;  %v2111_v58 = vsel %vm1066_vm3, %v2089_v56, -inf }
 0x479   : > { %2112 = vmax.xlane.f32.xlu1 %v2111_v58  ;;  %v2206_v58 = vmul.f32 %v4408_v10, %v4320_v43  ;;  %v2207_v43 = vmul.f32 %v4408_v10, %v4307_v33  ;;  %v2209_v33 = vmul.f32 %v4408_v10, %v4329_v50  ;;  %v3041_v50 = vld [vmem:[#allocation7] sm:$0xff] }
 0x47b   : > { %v2094_v41 = vpop.f32.mrb[22].mxu0 }
 0x47c   : > { %v3564_v59 = vpop.f32.mrb[23].mxu0  ;;  %v2114_v62 = vsel %vm1066_vm3, %v2094_v41, -inf }
 0x47d   : > { %2115 = vmax.xlane.f32.xlu0 %v2114_v62 }
 0x47f   : > { %v2099_v63 = vpop.f32.mrb[24].mxu0 }
 0x480   : > { %v3567_v2 = vpop.f32.mrb[25].mxu0  ;;  %v2117_v3 = vsel %vm1066_vm3, %v2099_v63, -inf }
 0x481   : > { %2118 = vmax.xlane.f32.xlu1 %v2117_v3  ;;  %v2212_v3 = vmul.f32 %v4408_v10, %v4348_v61  ;;  %v2211_v61 = vmul.f32 %v4408_v10, %v4345_v60  ;;  %v3043_v60 = vld [vmem:[#allocation7 + $0x10] sm:$0xff]  ;;  %v3044_v10 = vld [vmem:[#allocation7 + $0x18] sm:$0xff] }
 0x483   : > { %v2104_v0 = vpop.f32.mrb[26].mxu0 }
 0x484   : > { %v3570_v6 = vpop.f32.mrb[27].mxu0  ;;  %v2120_v9 = vsel %vm1066_vm3, %v2104_v0, -inf }
 0x485   : > { %2121 = vmax.xlane.f32.xlu0 %v2120_v9  ;;  %v3042_v9 = vld [vmem:[#allocation7 + $0x8] sm:$0xff] }
 0x502   : > { %v2110_v53 = vpop.xlane.xlu0 %2109 }
 0x503   : > { %v2123_v11 = vsub.f32 %v2084_v1, %v2110_v53  ;;  %v3667_v53 = vpack.c.bf16 %v3042_v9, %v3041_v50 }
 0x505   : > { %v2128_v13 = vmul.f32 1.442695, %v2123_v11  ;;  %v3671_v11 = vpack.c.bf16 %v3044_v10, %v3043_v60 }
 0x506   : > { %v2113_v14 = vpop.xlane.xlu1 %2112 }
 0x507   : > { %3777 = vpow2.f32 %v2128_v13  ;;  %v2124_v15 = vsub.f32 %v2089_v56, %v2113_v14  ;;  %v3045_v13 = vld [vmem:[#allocation7 + $0x20] sm:$0xff] }
 0x509   : > { %v2130_v17 = vmul.f32 1.442695, %v2124_v15 }
 0x50a   : > { %v2116_v18 = vpop.xlane.xlu0 %2115 }
 0x50b   : > { %3779 = vpow2.f32 %v2130_v17  ;;  %v2125_v19 = vsub.f32 %v2094_v41, %v2116_v18 }
 0x50d   : > { %v2132_v20 = vmul.f32 1.442695, %v2125_v19 }
 0x50e   : > { %v2119_v21 = vpop.xlane.xlu1 %2118 }
 0x50f   : > { %3781 = vpow2.f32 %v2132_v20  ;;  %v2126_v22 = vsub.f32 %v2099_v63, %v2119_v21 }
 0x511   : > { %v3778_v23 = vpop.eup %3777  ;;  %v2134_v24 = vmul.f32 1.442695, %v2126_v22 }
 0x512   : > { %v2122_v25 = vpop.xlane.xlu0 %2121  ;;  %v2138_v26 = vsel %vm1066_vm3, %v3778_v23, 0.0 }
 0x513   : > { %3783 = vpow2.f32 %v2134_v24  ;;  %v2127_v27 = vsub.f32 %v2104_v0, %v2122_v25  ;;  %2139 = vadd.xlane.f32.xlu1 %v2138_v26 }
 0x515   : > { %v3780_v4 = vpop.eup %3779  ;;  %v2136_v29 = vmul.f32 1.442695, %v2127_v27 }
 0x516   : > { %v2141_v30 = vsel %vm1066_vm3, %v3780_v4, 0.0 }
 0x517   : > { %3785 = vpow2.f32 %v2136_v29  ;;  %2142 = vadd.xlane.f32.xlu0 %v2141_v30 }
 0x519   : > { %v3782_v31 = vpop.eup %3781 }
 0x51a   : > { %v2144_v34 = vsel %vm1066_vm3, %v3782_v31, 0.0 }
 0x51b   : > { %2145 = vadd.xlane.f32.xlu1 %v2144_v34 }
 0x51d   : > { %v3784_v35 = vpop.eup %3783 }
 0x51e   : > { %v2147_v36 = vsel %vm1066_vm3, %v3784_v35, 0.0 }
 0x51f   : > { %2148 = vadd.xlane.f32.xlu0 %v2147_v36 }
 0x521   : > { %v3786_v37 = vpop.eup %3785 }
 0x522   : > { %v2150_v40 = vsel %vm1066_vm3, %v3786_v37, 0.0 }
 0x523   : > { %2151 = vadd.xlane.f32.xlu1 %v2150_v40 }
 0x5a0   : > { %v2140_v44 = vpop.xlane.xlu1 %2139 }
 0x5a1   : > { %3787 = vrcp.f32 %v2140_v44 }
 0x5a4   : > { %v2143_v45 = vpop.xlane.xlu0 %2142 }
 0x5a5   : > { %3789 = vrcp.f32 %v2143_v45 }
 0x5a8   : > { %v2146_v46 = vpop.xlane.xlu1 %2145 }
 0x5a9   : > { %3791 = vrcp.f32 %v2146_v46 }
 0x5ab   : > { %v3788_v8 = vpop.eup %3787 }
 0x5ac   : > { %v2154_v47 = vmul.f32 %v3788_v8, %v3778_v23  ;;  %v2149_v48 = vpop.xlane.xlu0 %2148 }
 0x5ad   : > { %3793 = vrcp.f32 %v2149_v48 }
 0x5ae   : > { %3574 = vmatmul.mubr.msk.f32.vlgmr.msra.gmra.mrb[18].mxu1 %vm1066_vm3, %v2154_v47  ;;  %v2218_v1 = vcombine.high %v2154_v47, %v2154_v47 }
 0x5af   : > { %3577 = vmatpush3.msra.mxu1 %v2204_v28  ;;  %3578 = vmatprep.mubr.msk.f32.mxu1 %vm3962_vm2, %v3963_v39  ;;  %v3790_v54 = vpop.eup %3789 }
 0x5b0   : > { %v2152_v49 = vpop.xlane.xlu1 %2151  ;;  %3581 = vmatprep.subr.mxu1 %v3963_v39  ;;  %v2156_v32 = vmul.f32 %v3790_v54, %v3780_v4 }
 0x5b1   : > { %3795 = vrcp.f32 %v2152_v49 }
 0x5b2   : > { %3579 = vmatmul.mubr.msk.f32.vlgmr.msra.gmra.mrb[20].mxu1 %vm1066_vm3, %v2218_v1  ;;  %v2219_v63 = vcombine.high %v2156_v32, %v2156_v32 }
 0x5b3   : > { %v3792_v56 = vpop.eup %3791  ;;  %3582 = vmatpush3.msra.mxu1 %v2205_v55  ;;  %3583 = vmatprep.mubr.msk.f32.mxu1 %vm3962_vm2, %v3963_v39 }
 0x5b4   : > { %v2158_v57 = vmul.f32 %v3792_v56, %v3782_v31  ;;  %3586 = vmatprep.subr.mxu1 %v3963_v39  ;;  %v2969_v56 = vrot.slane %v4534_v52, %v4229_v16 }
 0x5b6   : > { %v2220_v41 = vcombine.high %v2158_v57, %v2158_v57  ;;  %3584 = vmatmul.mubr.msk.f32.vlgmr.msra.gmra.mrb[22].mxu1 %vm1066_vm3, %v2156_v32 }
 0x5b7   : > { %v3794_v59 = vpop.eup %3793  ;;  %3587 = vmatpush3.msra.mxu1 %v2206_v58  ;;  %3588 = vmatprep.mubr.msk.f32.mxu1 %vm3962_vm2, %v3963_v39 }
 0x5b8   : > { %v2160_v62 = vmul.f32 %v3794_v59, %v3784_v35  ;;  %3599 = vmatmul.mubr.msk.f32.vlgmr.msra.gmra.mrb[28].mxu0 %vm1066_vm3, %v2220_v41  ;;  %3591 = vmatprep.subr.mxu1 %v3963_v39  ;;  %v2970_v41 = vcombine.high %v2969_v56, %v2969_v56 }
 0x5b9   : > { %3607 = vmatpush3.msra.mxu0 %v2210_v42  ;;  %3608 = vmatprep.mubr.msk.f32.mxu0 %vm3962_vm2, %v3963_v39  ;;  %v2977_v42 = vrot.slane %v2969_v56, %v4229_v16 }
 0x5ba   : > { %3589 = vmatmul.mubr.msk.f32.vlgmr.msra.gmra.mrb[24].mxu1 %vm1066_vm3, %v2219_v63  ;;  %3616 = vmatprep.subr.mxu0 %v3963_v39  ;;  %v2221_v51 = vcombine.high %v2160_v62, %v2160_v62 }
 0x5bb   : > { %v3796_v2 = vpop.eup %3795  ;;  %3592 = vmatpush3.msra.mxu1 %v2207_v43  ;;  %3593 = vmatprep.mubr.msk.f32.mxu1 %vm3962_vm2, %v3963_v39  ;;  %v2984_v43 = vrot.slane %v2970_v41, %v4229_v16 }
 0x5bc   : > { %v2162_v0 = vmul.f32 %v3796_v2, %v3786_v37  ;;  %3609 = vmatmul.mubr.msk.f32.vlgmr.msra.gmra.mrb[30].mxu0 %vm1066_vm3, %v2221_v51  ;;  %3601 = vmatprep.subr.mxu1 %v3963_v39 }
 0x5bd   : > { %3617 = vmatpush3.msra.mxu0 %v2212_v3  ;;  %3618 = vmatprep.mubr.msk.f32.mxu0 %vm3962_vm2, %v3963_v39  ;;  %v2985_v3 = vcombine.high %v2977_v42, %v2977_v42  ;;  %v2986_v50 = vcombine.high %v2984_v43, %v2984_v43 }
 0x5be   : > { %3594 = vmatmul.mubr.msk.f32.vlgmr.msra.gmra.mrb[26].mxu1 %vm1066_vm3, %v2158_v57  ;;  %v2222_v6 = vcombine.high %v2162_v0, %v2162_v0 }
 0x5bf   : > { %3602 = vmatpush3.msra.mxu1 %v2209_v33  ;;  %3603 = vmatprep.mubr.msk.f32.mxu1 %vm3962_vm2, %v3963_v39 }
 0x5c0   : > { %3619 = vmatmul.mubr.msk.f32.vlgmr.msra.gmra.mrb[32].mxu0 %vm1066_vm3, %v2222_v6  ;;  %3611 = vmatprep.subr.mxu1 %v3963_v39 }
 0x5c2   : > { %3604 = vmatmul.mubr.msk.f32.vlgmr.msra.gmra.mrb[28].mxu1 %vm1066_vm3, %v2160_v62 }
 0x5c3   : > { %3612 = vmatpush3.msra.mxu1 %v2211_v61  ;;  %3613 = vmatprep.mubr.msk.f32.mxu1 %vm3962_vm2, %v3963_v39 }
 0x5c4   : > { %3666 = vmatprep.subr.bf16.mxu1 %v3961_v38 }
 0x5c6   : > { %3614 = vmatmul.mubr.msk.f32.vlgmr.msra.gmra.mrb[30].mxu1 %vm1066_vm3, %v2162_v0 }
 0x5c7   : > { %3631 = vmatprep.mubr.msk.f32.mxu1 %vm3962_vm2, %v3963_v39  ;;  %vm3183_vm2 = vcmask 320512  }
 0x5ca   : > { %3669 = vmatpush3.bf16.xpose.msk.msra.mxu1 %vm4147_vm1, %v3667_v53 }
 0x5cb   : > { %3670 = vmatprep.subr.bf16.mxu1 %v3961_v38 }
 0x5d2   : > { %3673 = vmatpush3.bf16.xpose.msk.msra.mxu1 %vm4147_vm1, %v3671_v11  ;;  %vm3036_vm1 = vcmask 1040384  }
 0x5d3   : > { %3629 = vmatprep.subr.mxu1 %v3963_v39 }
 0x5da   : > { %3630 = vmatpush3.xpose.msk.msra.mxu1 %vm319_vm0, %v3045_v13 }
 0x681   : > { %v2291_v14 = vpop.f32.mrb[18].mxu1 }
 0x682   : > { %v3575_v15 = vpop.f32.mrb[19].mxu1  ;;  %v2943_v18 = vsel %vm1902_vm4, %v2291_v14, 0.0 }
 0x685   : > { %v2363_v17 = vpop.f32.mrb[20].mxu1 }
 0x686   : > { %v2944_v19 = vsel %vm1902_vm4, %v2363_v17, 0.0  ;;  %v3580_v20 = vpop.f32.mrb[21].mxu1  ;;  %v3356_v17 = vld [vmem:[%s4687_s4] ss:$0 sm:$0xff] }
 0x687   : > { %v2945_v38 = vadd.f32 %v2944_v19, %v2943_v18 }
 0x689   : > { %v2435_v21 = vpop.f32.mrb[22].mxu1 }
 0x68a   : > { %v2946_v22 = vsel %vm1902_vm4, %v2435_v21, 0.0  ;;  %v3585_v23 = vpop.f32.mrb[23].mxu1 }
 0x68b   : > { %v2947_v5 = vadd.f32 %v2946_v22, %v2945_v38  ;;  %v2651_v24 = vpop.f32.mrb[28].mxu0 }
 0x68c   : > { %v3600_v25 = vpop.f32.mrb[29].mxu0  ;;  %v2952_v40 = vsel %vm1902_vm4, %v2651_v24, 0.0 }
 0x68d   : > { %v2507_v39 = vpop.f32.mrb[24].mxu1 }
 0x68e   : > { %v2948_v26 = vsel %vm1902_vm4, %v2507_v39, 0.0  ;;  %v3590_v27 = vpop.f32.mrb[25].mxu1 }
 0x68f   : > { %v2949_v4 = vadd.f32 %v2948_v26, %v2947_v5  ;;  %v2795_v29 = vpop.f32.mrb[30].mxu0 }
 0x690   : > { %v3610_v30 = vpop.f32.mrb[31].mxu0  ;;  %v2956_v28 = vsel %vm1902_vm4, %v2795_v29, 0.0 }
 0x691   : > { %v2579_v31 = vpop.f32.mrb[26].mxu1 }
 0x692   : > { %v2950_v34 = vsel %vm1902_vm4, %v2579_v31, 0.0  ;;  %v3595_v35 = vpop.f32.mrb[27].mxu1 }
 0x693   : > { %v2951_v36 = vadd.f32 %v2950_v34, %v2949_v4  ;;  %v2939_v37 = vpop.f32.mrb[32].mxu0 }
 0x694   : > { %v3620_v44 = vpop.f32.mrb[33].mxu0  ;;  %v2960_v57 = vsel %vm1902_vm4, %v2939_v37, 0.0 }
 0x695   : > { %v2723_v45 = vpop.f32.mrb[28].mxu1  ;;  %v2953_v46 = vadd.f32 %v2952_v40, %v2951_v36 }
 0x696   : > { %v2954_v8 = vsel %vm1902_vm4, %v2723_v45, 0.0  ;;  %v3605_v47 = vpop.f32.mrb[29].mxu1 }
 0x697   : > { %v2955_v48 = vadd.f32 %v2954_v8, %v2953_v46 }
 0x699   : > { %v2867_v49 = vpop.f32.mrb[30].mxu1  ;;  %v2957_v1 = vadd.f32 %v2956_v28, %v2955_v48 }
 0x69a   : > { %v2958_v54 = vsel %vm1902_vm4, %v2867_v49, 0.0  ;;  %v3615_v55 = vpop.f32.mrb[31].mxu1 }
 0x69b   : > { %v2959_v32 = vadd.f32 %v2958_v54, %v2957_v1 }
 0x69d   : > { %v2961_v58 = vadd.f32 %v2960_v57, %v2959_v32 }
 0x69f   : > { %v2998_v59 = vrot.slane %v2961_v58, %v4229_v16 }
 0x6a1   : > { %v2999_v62 = vcombine.high %v2998_v59, %v2998_v59  ;;  %v3006_v63 = vrot.slane %v2998_v59, %v4229_v16 }
 0x6a3   : > { %v3013_v51 = vrot.slane %v2999_v62, %v4229_v16  ;;  %v3014_v2 = vcombine.high %v3006_v63, %v3006_v63  ;;  %v3019_v52 = vrot.slane %v3006_v63, %v4218_v7 }
 0x6a5   : > { %v3015_v0 = vcombine.high %v3013_v51, %v3013_v51  ;;  %v3023_v33 = vrot.slane %v3013_v51, %v4218_v7  ;;  %v3027_v6 = vrot.slane %v3014_v2, %v4218_v7  ;;  %v3037_v61 = vsel %vm3036_vm1, %v2977_v42, %v3019_v52 }
 0x6a7   : > { %v3031_v9 = vrot.slane %v3015_v0, %v4218_v7  ;;  %v3038_v53 = vsel %vm3036_vm1, %v2984_v43, %v3023_v33  ;;  %v3039_v60 = vsel %vm3036_vm1, %v2985_v3, %v3027_v6 }
 0x6a8   : > { %v3057_v10 = vcombine.low %v3037_v61, %v3038_v53 }
 0x6a9   : > { %v3040_v11 = vsel %vm3036_vm1, %v2986_v50, %v3031_v9 }
 0x6aa   : > { %v3058_v13 = vcombine.low %v3039_v60, %v3040_v11  ;;  %v3065_v16 = vrot.slane %v3057_v10, %v4152_v12 }
 0x6ac   : > { %v3072_v14 = vrot.slane %v3058_v13, %v4152_v12 }
 0x6ae   : > { %v3073_v15 = vcombine.low %v3065_v16, %v3072_v14 }
 0x6b0   : > { %3632 = vmatmul.mubr.msk.f32.vlgmr.msra.gmra.mrb[32].mxu1 %vm319_vm0, %v3073_v15 }
 0x783   : > { %v3157_v7 = vpop.f32.mrb[32].mxu1 }
 0x784   : > { %v3158_v18 = vadd.f32 %v3356_v17, %v3157_v7  ;;  %v3633_v19 = vpop.f32.mrb[33].mxu1 }
 0x786   : > { %v3162_v20 = vcombine.high %v3158_v18, %v3158_v18  ;;  %v3169_v38 = vrot.slane %v3158_v18, %v4152_v12 }
 0x788   : > { %v3176_v21 = vrot.slane %v3162_v20, %v4152_v12  ;;  %v3177_v22 = vcombine.high %v3169_v38, %v3169_v38  ;;  %3184 = vst.msk [vmem:[%s246_s10] sm:$0x3] %vm3183_vm2, %v3169_v38 }
 0x78a   : > { %v3178_v23 = vcombine.high %v3176_v21, %v3176_v21  ;;  %3185 = vst.msk [vmem:[%s246_s10 + $0x2] sm:$0x3] %vm3183_vm2, %v3177_v22  ;;  %3186 = vst.msk [vmem:[%s246_s10 + $0x4] sm:$0x3] %vm3183_vm2, %v3176_v21 }
 0x78c   : > { %3187 = vst.msk [vmem:[%s246_s10 + $0x6] sm:$0x3] %vm3183_vm2, %v3178_v23 }
 0x78d   : > { %3894 = shalt.err (!%p3891_p8)
}
 0x78e   : > { %s3895_s13 = scalar_lea.hbm %s4640_s30, 128  ;;  %s3899_s17 = scalar_lea.hbm %s4688_s5, 256 }
 0x78f   : > { %p3896_p11 = scmp.ne.s32.totalorder %s4640_s30, %s3895_s13  ;;  %p3900_p6 = scmp.lt.u32.totalorder %s4640_s30, %s4688_s5 }
 0x790   : > { %p3901_p9 = scmp.lt.u32.totalorder %s3899_s17, %s3895_s13  ;;  %p3903_p12 = scmp.lt.u32.totalorder %s3895_s13, %s4640_s30 }
 0x791   : > { %p3897_p5 = pnand %p3896_p11, %p4718_p13 }
 0x792   : > { %p3902_p10 = por %p3901_p9, %p3900_p6 }
 0x793   : > { %p3898_p0 = pneg %p3897_p5 }
 0x794   : > { %p3904_p1 = por %p3903_p12, %p3902_p10 }
 0x796   : > { %p3905_p2 = pnand %p3904_p1, %p3898_p0 }
 0x798   : > { %3908 = shalt.err (!%p3905_p2)
}
 0x799   : > { %s3966_s7 = smov 32   ;;  %s3967_s10 = smov 2  }
 0x79a   : > { %3688 = dma.vmem_to_hbm [thread:$0]  (%p4718_p13), %s4635_s26, 128, %s4640_s30, %s4642_s8, %s3966_s7, %s3966_s7, %s3967_s10  }
 0x79b PF: > { %p3710_p3 = scmp.ge.s32.totalorder %s3951_s21, 2  ;;  %s3217_s9 = sand.u32 1, %s3939_s18  }
 0x79c   : > { %p4719_p4 = scmp.ne.s32.totalorder %s4696_s29, 0  ;;  %s3218_s1 = scalar_lea.sflag [#allocation4], %s3217_s9 }
 0x79e   : > { %p3701_p7 = pnand %p3710_p3, %p4719_p4 }
 0x7a0   : > { %3934 = dma.done.wait (!%p3701_p7), %s3218_s1, 128  }
 0x7a1   : > { %3936 = vsyncadd (!%p3701_p7), %s3218_s1, 4294967168  ;;  %p17_p8 = scmp.ge.s32.totalorder %s4023_s24, 4   ;;  %s4720_s18 = smov %s3943_s19 }
 0x7a2   : > { %s4721_s19 = smov %s3947_s20  ;;  %s4722_s20 = smov %s4034_s27 }
 0x7a3   : > { %s4723_s21 = smov %s4023_s24  ;;  %19 = sbr.rel (!%p17_p8) target bundleno = 7 (0x7), region = 90 }
 0x7aa   :  { %3223 = vsyncpa [#allocation3], 1 }
 0x7ab   :  { %3225 = vsyncpa [#allocation3 + $0x1], 1 }
 0x7ac   :  { %3226 = vsyncpa [#allocation6], 1 }
 0x7ad   :  { %3227 = vsyncpa [#allocation4], 1 }
 0x7ae   :  { %3229 = vsyncpa [#allocation4 + $0x1], 1 }

</bundles_post_ra>
